<compile_context>
chip_gen: v5e
topology: v5e:2x2
jax: 0.10.0
libtpu: 0.0.40
codegen_flags: <defaults>
</compile_context>

<pallas_src>
import numpy as np

import jax
import jax.numpy as jnp
from jax.experimental import pallas as pl
from jax.experimental.pallas import tpu as pltpu

LANE = 128     # vreg lane width / channel padding granularity
HIDDEN = 32    # hyper-MLP hidden width
TILE_P = 128   # pooled-position tile (multiple of 16 keeps in-kernel concat aligned)


def _round_up(x, m):
    return ((x + m - 1) // m) * m


def _pad2(a, rows, cols):
    return jnp.pad(a, ((0, rows - a.shape[0]), (0, cols - a.shape[1])))


def _morton_perm(h, w):
    """perm[m] = row-major flat index of the m-th Z-order (Morton) position."""
    assert h == w and (h & (h - 1)) == 0, "Morton layout needs square power-of-2 spatial dims"
    bits = int(np.log2(h))
    ii, jj = np.meshgrid(np.arange(h), np.arange(w), indexing="ij")
    z = np.zeros_like(ii)
    for b in range(bits):
        z |= ((jj >> b) & 1) << (2 * b)
        z |= ((ii >> b) & 1) << (2 * b + 1)
    perm = np.empty(h * w, dtype=np.int32)
    perm[z.reshape(-1)] = np.arange(h * w, dtype=np.int32)
    return jnp.asarray(perm)


# --------------------------------------------------------------------------
# Pallas kernel: 1x1 conv + gelu + ZZW gate + fused 2x2 avg pool + channel sums
# --------------------------------------------------------------------------
def sfne_block_kernel(x_ref, gate_ref, w_ref, b_ref, o_ref, sums_ref):
    # x_ref   : (tP, 4*Cin) bf16  Morton layout: cols [q*Cin:(q+1)*Cin] are the
    #                             channels of quad member q of each 2x2 window.
    # gate_ref: (1, Cout)  f32    sigmoid slow-path gate, 0.25 pool factor folded in.
    # w_ref   : (Cin, Cout) bf16  pointwise-conv weight.
    # b_ref   : (1, Cout)  f32    bias.
    # o_ref   : (tP, Cout) bf16   gated, 2x2-average-pooled output (next level Morton order).
    # sums_ref: (8, Cout)  f32    per-tile channel sums of o (row-broadcast) -> next slow path.
    tP = o_ref.shape[0]
    cin = w_ref.shape[0]
    w = w_ref[...]
    b = b_ref[...]
    xq = [x_ref[:, q * cin:(q + 1) * cin] for q in range(4)]   # aligned lane slices

    if tP % 16 == 0:
        # One long MXU matmul (M = 4*tP) then aligned slab sums (quad folded into M).
        x = jnp.concatenate(xq, axis=0)                          # (4*tP, Cin) bf16
        y = jnp.dot(x, w, preferred_element_type=jnp.float32) + b
        # TODO(synk): PyTorch nn.GELU default is exact erf; tanh approx used here.
        t = jax.nn.gelu(y, approximate=True)                     # (4*tP, Cout) f32
        acc = t[0:tP] + t[tP:2 * tP] + t[2 * tP:3 * tP] + t[3 * tP:4 * tP]
    else:
        # Tiny tiles (deep blocks): 4 small matmuls; avoids unaligned sublane concat.
        acc = None
        for xqi in xq:
            y = jnp.dot(xqi, w, preferred_element_type=jnp.float32) + b
            t = jax.nn.gelu(y, approximate=True)
            acc = t if acc is None else acc + t

    o = acc * gate_ref[...]                                      # 0.25 already in gate
    o_ref[...] = o.astype(o_ref.dtype)
    sums_ref[...] = jnp.broadcast_to(jnp.sum(o, axis=0, keepdims=True), sums_ref.shape)


def sfne_block(x, gate, wc_bf16, bc, *, tile_p=TILE_P):
    """x: (N, P, 4*Cin) bf16 quad-minor Morton view -> (o, channel_sums).

    o          : (N, P, Cout) bf16, pooled + gated output (Morton order for next block)
    channel_sums: (N, Cout) f32, per-image channel sums of o (next slow path / final pool)
    """
    N, P, C4 = x.shape
    Cin, Cout = wc_bf16.shape
    assert C4 == 4 * Cin
    tP = P if P <= tile_p else tile_p
    assert P % tP == 0, "pooled spatial extent must tile evenly (power-of-2 square input)"
    n_tiles = P // tP

    o, sums = pl.pallas_call(
        sfne_block_kernel,
        out_shape=(
            jax.ShapeDtypeStruct((N, P, Cout), jnp.bfloat16),
            jax.ShapeDtypeStruct((N, n_tiles, 8, Cout), jnp.float32),
        ),
        grid=(N, n_tiles),
        in_specs=[
            pl.BlockSpec((None, tP, 4 * Cin), lambda n, s: (n, s, 0)),
            pl.BlockSpec((None, 1, Cout), lambda n, s: (n, 0, 0)),
            pl.BlockSpec((Cin, Cout), lambda n, s: (0, 0)),
            pl.BlockSpec((1, Cout), lambda n, s: (0, 0)),
        ],
        out_specs=(
            pl.BlockSpec((None, tP, Cout), lambda n, s: (n, s, 0)),
            pl.BlockSpec((None, None, 8, Cout), lambda n, s: (n, s, 0, 0)),
        ),
        compiler_params=pltpu.CompilerParams(
            dimension_semantics=("parallel", "parallel"),
            vmem_limit_bytes=32 * 1024 * 1024),
    )(x, gate.reshape(N, 1, Cout), wc_bf16, bc)

    return o, sums[:, :, 0, :].sum(axis=1)


# --------------------------------------------------------------------------
# Parameters (output channel dims zero-padded to multiples of 128)
# --------------------------------------------------------------------------
def init_params(key, num_classes=10, input_channels=3, hidden=HIDDEN):
    channels = [(input_channels, 64), (64, 128), (128, 256), (256, 512)]
    blocks = []
    for idx, (cin, cout) in enumerate(channels):
        # Block 0 runs in plain XLA, so its input channels stay unpadded (Cin=3);
        # only its outputs are lane-padded so it feeds the Pallas blocks directly.
        cin_p = cin if idx == 0 else _round_up(cin, LANE)
        cout_p = _round_up(cout, LANE)
        wdtype = jnp.float32 if idx == 0 else jnp.bfloat16
        key, k1, k2, k3 = jax.random.split(key, 4)
        wc = jax.random.normal(k1, (cin, cout), jnp.float32) / jnp.sqrt(cin)
        wm1 = jax.random.normal(k2, (cin, hidden), jnp.float32) / jnp.sqrt(cin)
        wm2 = jax.random.normal(k3, (hidden, cout), jnp.float32) / jnp.sqrt(hidden)
        blocks.append(dict(
            wc=_pad2(wc, cin_p, cout_p).astype(wdtype),
            bc=jnp.zeros((1, cout_p), jnp.float32),
            wm1=_pad2(wm1, cin_p, hidden),
            bm1=jnp.zeros((1, hidden), jnp.float32),
            wm2=_pad2(wm2, hidden, cout_p),
            bm2=jnp.zeros((1, cout_p), jnp.float32),
        ))
    key, kc = jax.random.split(key)
    cls_w = jax.random.normal(kc, (512, num_classes), jnp.float32) / jnp.sqrt(512.0)
    cls_b = jnp.zeros((num_classes,), jnp.float32)
    return {"blocks": blocks, "cls_w": cls_w, "cls_b": cls_b}


def _hyper_gate(mean_in, blk):
    """slow path: global context -> 2-layer hyper MLP -> sigmoid gate (x0.25 pool factor)."""
    h = jax.nn.gelu(mean_in @ blk["wm1"] + blk["bm1"], approximate=True)
    return jax.nn.sigmoid(h @ blk["wm2"] + blk["bm2"]) * 0.25


# --------------------------------------------------------------------------
# Forward pass
# --------------------------------------------------------------------------
@jax.jit
def terminator_forward(x_nchw, params):
    N, C, H, W = x_nchw.shape
    assert H == W and (H & (H - 1)) == 0, "power-of-two square inputs expected"
    S = H * W

    # NCHW -> (N, S, C) with the spatial axis in Morton (Z-curve) order: every 4
    # consecutive positions form a 2x2 window recursively, so the fused pool
    # never needs a transpose between blocks.
    perm = _morton_perm(H, W)
    x = jnp.transpose(x_nchw, (0, 2, 3, 1)).reshape(N, S, C)[:, perm, :]

    blocks = params["blocks"]

    # ---- block 1 in plain XLA: Cin=3 gains nothing from the MXU and padding the
    # image to 128 channels would inflate first-block HBM traffic ~42x. ----
    b0 = blocks[0]
    gate = _hyper_gate(jnp.mean(x, axis=1), b0)                       # (N, 128)
    y = jax.nn.gelu(x @ b0["wc"] + b0["bc"], approximate=True)        # (N, S, 128)
    P = S // 4
    y = y.reshape(N, P, 4, y.shape[-1]).sum(axis=2) * gate[:, None, :]  # fused 2x2 avg pool
    ch_sum = jnp.sum(y, axis=1)                                       # (N, 128) -> block-2 slow path
    x = y.astype(jnp.bfloat16)                                        # bf16 Morton activation

    # ---- blocks 2..4: Pallas kernel; slow-path mean comes from the previous
    # block's fused channel sums (no extra HBM pass over the activation). ----
    for blk in blocks[1:]:
        Nb, P, Cp = x.shape
        assert P % 4 == 0, "2x2 pool needs at least 4 remaining Morton positions"
        gate = _hyper_gate(ch_sum / P, blk)                           # (N, Cout_p)
        xq = x.reshape(Nb, P // 4, 4 * Cp)                            # quad-minor view (free)
        x, ch_sum = sfne_block(xq, gate, blk["wc"], blk["bc"])

    # adaptive_avg_pool2d(1) == channel sums of the last block / its spatial extent,
    # already produced by the kernel; classifier is tiny, plain JAX.
    pooled = ch_sum / x.shape[1]                                      # (N, 512)
    return pooled @ params["cls_w"] + params["cls_b"]


if __name__ == "__main__":
    key = jax.random.PRNGKey(0)
    key, kx = jax.random.split(key)
    num_classes = 10
    x = jax.random.normal(kx, (2, 3, 16, 16), jnp.float32)   # NCHW, like torch
    params = init_params(key, num_classes=num_classes, input_channels=3)

    out = terminator_forward(x, params)
    jax.block_until_ready(out)
    assert out.shape == (2, num_classes), out.shape
    print("KERNEL_OK")
</pallas_src>

<mosaic_0001>
module attributes {stable_mosaic.version = 11 : i64} {
  func.func @sfne_block_kernel(%arg0: i32, %arg1: i32, %arg2: memref<1x16x512xbf16, #tpu.memory_space<vmem>>, %arg3: memref<1x1x128xf32, #tpu.memory_space<vmem>>, %arg4: memref<128x128xbf16, #tpu.memory_space<vmem>>, %arg5: memref<1x128xf32, #tpu.memory_space<vmem>>, %arg6: memref<1x16x128xbf16, #tpu.memory_space<vmem>>, %arg7: memref<1x1x8x128xf32, #tpu.memory_space<vmem>>) attributes {dimension_semantics = [#tpu.dimension_semantics<parallel>, #tpu.dimension_semantics<parallel>], iteration_bounds = array<i64: 2, 1>, scalar_prefetch = 0 : i64, scratch_operands = 0 : i64, tpu.core_type = #tpu.core_type<tc>, window_params = [{transform_indices = @transform_0, window_bounds = array<i64: 1, 16, 512>}, {transform_indices = @transform_1, window_bounds = array<i64: 1, 1, 128>}, {pipeline_mode = #tpu.pipeline_mode<synchronous>, transform_indices = @transform_2, window_bounds = array<i64: 128, 128>}, {pipeline_mode = #tpu.pipeline_mode<synchronous>, transform_indices = @transform_3, window_bounds = array<i64: 1, 128>}, {transform_indices = @transform_4, window_bounds = array<i64: 1, 16, 128>}, {transform_indices = @transform_5, window_bounds = array<i64: 1, 1, 8, 128>}]} {
    %c0 = arith.constant 0 : index
    %c0_0 = arith.constant 0 : index
    %0 = vector.load %arg4[%c0, %c0_0] : memref<128x128xbf16, #tpu.memory_space<vmem>>, vector<128x128xbf16>
    %c0_1 = arith.constant 0 : index
    %c0_2 = arith.constant 0 : index
    %1 = vector.load %arg5[%c0_1, %c0_2] : memref<1x128xf32, #tpu.memory_space<vmem>>, vector<1x128xf32>
    %c0_3 = arith.constant 0 : index
    %c0_4 = arith.constant 0 : index
    %c0_5 = arith.constant 0 : index
    %2 = vector.load %arg2[%c0_3, %c0_4, %c0_5] : memref<1x16x512xbf16, #tpu.memory_space<vmem>>, vector<1x16x128xbf16>
    %3 = vector.shape_cast %2 : vector<1x16x128xbf16> to vector<16x128xbf16>
    %c0_6 = arith.constant 0 : index
    %c0_7 = arith.constant 0 : index
    %c128 = arith.constant 128 : index
    %4 = vector.load %arg2[%c0_6, %c0_7, %c128] : memref<1x16x512xbf16, #tpu.memory_space<vmem>>, vector<1x16x128xbf16>
    %5 = vector.shape_cast %4 : vector<1x16x128xbf16> to vector<16x128xbf16>
    %c0_8 = arith.constant 0 : index
    %c0_9 = arith.constant 0 : index
    %c256 = arith.constant 256 : index
    %6 = vector.load %arg2[%c0_8, %c0_9, %c256] : memref<1x16x512xbf16, #tpu.memory_space<vmem>>, vector<1x16x128xbf16>
    %7 = vector.shape_cast %6 : vector<1x16x128xbf16> to vector<16x128xbf16>
    %c0_10 = arith.constant 0 : index
    %c0_11 = arith.constant 0 : index
    %c384 = arith.constant 384 : index
    %8 = vector.load %arg2[%c0_10, %c0_11, %c384] : memref<1x16x512xbf16, #tpu.memory_space<vmem>>, vector<1x16x128xbf16>
    %9 = vector.shape_cast %8 : vector<1x16x128xbf16> to vector<16x128xbf16>
    %10 = tpu.concatenate %3, %5, %7, %9 in 0 : vector<16x128xbf16>, vector<16x128xbf16>, vector<16x128xbf16>, vector<16x128xbf16> -> vector<64x128xbf16>
    %cst = arith.constant dense<0.000000e+00> : vector<64x128xf32>
    %11 = tpu.matmul %10, %0, %cst {dimension_numbers = #tpu.dot_dimension_numbers<[1], [0], [0], [1], [0, 0, 1, 1], [], []>} : vector<64x128xbf16>, vector<128x128xbf16>, vector<64x128xf32> -> vector<64x128xf32>
    %12 = vector.broadcast %1 : vector<1x128xf32> to vector<64x128xf32>
    %13 = arith.addf %11, %12 : vector<64x128xf32>
    %14 = arith.mulf %13, %13 : vector<64x128xf32>
    %15 = arith.mulf %13, %14 : vector<64x128xf32>
    %cst_12 = arith.constant 4.471500e-02 : f32
    %16 = vector.broadcast %cst_12 : f32 to vector<64x128xf32>
    %17 = arith.mulf %16, %15 : vector<64x128xf32>
    %18 = arith.addf %13, %17 : vector<64x128xf32>
    %cst_13 = arith.constant 0.797884583 : f32
    %19 = vector.broadcast %cst_13 : f32 to vector<64x128xf32>
    %20 = arith.mulf %19, %18 : vector<64x128xf32>
    %21 = math.tanh %20 : vector<64x128xf32>
    %cst_14 = arith.constant 1.000000e+00 : f32
    %22 = vector.broadcast %cst_14 : f32 to vector<64x128xf32>
    %23 = arith.addf %22, %21 : vector<64x128xf32>
    %cst_15 = arith.constant 5.000000e-01 : f32
    %24 = vector.broadcast %cst_15 : f32 to vector<64x128xf32>
    %25 = arith.mulf %24, %23 : vector<64x128xf32>
    %26 = arith.mulf %13, %25 : vector<64x128xf32>
    %27 = vector.extract_strided_slice %26 {offsets = [0, 0], sizes = [16, 128], strides = [1, 1]} : vector<64x128xf32> to vector<16x128xf32>
    %28 = vector.extract_strided_slice %26 {offsets = [16, 0], sizes = [16, 128], strides = [1, 1]} : vector<64x128xf32> to vector<16x128xf32>
    %29 = arith.addf %27, %28 : vector<16x128xf32>
    %30 = vector.extract_strided_slice %26 {offsets = [32, 0], sizes = [16, 128], strides = [1, 1]} : vector<64x128xf32> to vector<16x128xf32>
    %31 = arith.addf %29, %30 : vector<16x128xf32>
    %32 = vector.extract_strided_slice %26 {offsets = [48, 0], sizes = [16, 128], strides = [1, 1]} : vector<64x128xf32> to vector<16x128xf32>
    %33 = arith.addf %31, %32 : vector<16x128xf32>
    %c0_16 = arith.constant 0 : index
    %c0_17 = arith.constant 0 : index
    %c0_18 = arith.constant 0 : index
    %34 = vector.load %arg3[%c0_16, %c0_17, %c0_18] : memref<1x1x128xf32, #tpu.memory_space<vmem>>, vector<1x1x128xf32>
    %35 = vector.shape_cast %34 : vector<1x1x128xf32> to vector<1x128xf32>
    %36 = vector.broadcast %35 : vector<1x128xf32> to vector<16x128xf32>
    %37 = arith.mulf %33, %36 : vector<16x128xf32>
    %38 = arith.truncf %37 : vector<16x128xf32> to vector<16x128xbf16>
    %c0_19 = arith.constant 0 : index
    %c0_20 = arith.constant 0 : index
    %c0_21 = arith.constant 0 : index
    %39 = vector.load %arg6[%c0_19, %c0_20, %c0_21] : memref<1x16x128xbf16, #tpu.memory_space<vmem>>, vector<1x16x128xbf16>
    %40 = vector.shape_cast %39 : vector<1x16x128xbf16> to vector<16x128xbf16>
    %41 = vector.shape_cast %38 : vector<16x128xbf16> to vector<1x16x128xbf16>
    tpu.vector_store %arg6[%c0_19, %c0_20, %c0_21], %41 {strides = array<i32>} : memref<1x16x128xbf16, #tpu.memory_space<vmem>>, vector<1x16x128xbf16>,
    %cst_22 = arith.constant dense<0.000000e+00> : vector<128xf32>
    %42 = vector.multi_reduction <add>, %37, %cst_22 [0] : vector<16x128xf32> to vector<128xf32>
    %43 = vector.shape_cast %42 : vector<128xf32> to vector<1x128xf32>
    %44 = vector.shape_cast %43 : vector<1x128xf32> to vector<1x128xf32>
    %45 = vector.broadcast %44 : vector<1x128xf32> to vector<8x128xf32>
    %c0_23 = arith.constant 0 : index
    %c0_24 = arith.constant 0 : index
    %c0_25 = arith.constant 0 : index
    %c0_26 = arith.constant 0 : index
    %46 = vector.load %arg7[%c0_23, %c0_24, %c0_25, %c0_26] : memref<1x1x8x128xf32, #tpu.memory_space<vmem>>, vector<1x1x8x128xf32>
    %47 = vector.shape_cast %46 : vector<1x1x8x128xf32> to vector<8x128xf32>
    %48 = vector.shape_cast %45 : vector<8x128xf32> to vector<1x1x8x128xf32>
    tpu.vector_store %arg7[%c0_23, %c0_24, %c0_25, %c0_26], %48 {strides = array<i32>} : memref<1x1x8x128xf32, #tpu.memory_space<vmem>>, vector<1x1x8x128xf32>,
    return
  }
  func.func @transform_0(%arg0: i32, %arg1: i32) -> (i32, i32, i32) {
    %c0_i32 = arith.constant 0 : i32
    %c0_i32_0 = arith.constant 0 : i32
    return %arg0, %arg1, %c0_i32 : i32, i32, i32
  }
  func.func @transform_1(%arg0: i32, %arg1: i32) -> (i32, i32, i32) {
    %c0_i32 = arith.constant 0 : i32
    %c0_i32_0 = arith.constant 0 : i32
    %c0_i32_1 = arith.constant 0 : i32
    return %arg0, %c0_i32, %c0_i32_0 : i32, i32, i32
  }
  func.func @transform_2(%arg0: i32, %arg1: i32) -> (i32, i32) {
    %c0_i32 = arith.constant 0 : i32
    %c0_i32_0 = arith.constant 0 : i32
    %c0_i32_1 = arith.constant 0 : i32
    return %c0_i32, %c0_i32_0 : i32, i32
  }
  func.func @transform_3(%arg0: i32, %arg1: i32) -> (i32, i32) {
    %c0_i32 = arith.constant 0 : i32
    %c0_i32_0 = arith.constant 0 : i32
    %c0_i32_1 = arith.constant 0 : i32
    return %c0_i32, %c0_i32_0 : i32, i32
  }
  func.func @transform_4(%arg0: i32, %arg1: i32) -> (i32, i32, i32) {
    %c0_i32 = arith.constant 0 : i32
    %c0_i32_0 = arith.constant 0 : i32
    return %arg0, %arg1, %c0_i32 : i32, i32, i32
  }
  func.func @transform_5(%arg0: i32, %arg1: i32) -> (i32, i32, i32, i32) {
    %c0_i32 = arith.constant 0 : i32
    %c0_i32_0 = arith.constant 0 : i32
    %c0_i32_1 = arith.constant 0 : i32
    return %arg0, %arg1, %c0_i32, %c0_i32_0 : i32, i32, i32, i32
  }
}

module attributes {stable_mosaic.version = 11 : i64} {
  func.func @sfne_block_kernel(%arg0: i32, %arg1: i32, %arg2: memref<1x4x512xbf16, #tpu.memory_space<vmem>>, %arg3: memref<1x1x256xf32, #tpu.memory_space<vmem>>, %arg4: memref<128x256xbf16, #tpu.memory_space<vmem>>, %arg5: memref<1x256xf32, #tpu.memory_space<vmem>>, %arg6: memref<1x4x256xbf16, #tpu.memory_space<vmem>>, %arg7: memref<1x1x8x256xf32, #tpu.memory_space<vmem>>) attributes {dimension_semantics = [#tpu.dimension_semantics<parallel>, #tpu.dimension_semantics<parallel>], iteration_bounds = array<i64: 2, 1>, scalar_prefetch = 0 : i64, scratch_operands = 0 : i64, tpu.core_type = #tpu.core_type<tc>, window_params = [{transform_indices = @transform_0, window_bounds = array<i64: 1, 4, 512>}, {transform_indices = @transform_1, window_bounds = array<i64: 1, 1, 256>}, {pipeline_mode = #tpu.pipeline_mode<synchronous>, transform_indices = @transform_2, window_bounds = array<i64: 128, 256>}, {pipeline_mode = #tpu.pipeline_mode<synchronous>, transform_indices = @transform_3, window_bounds = array<i64: 1, 256>}, {transform_indices = @transform_4, window_bounds = array<i64: 1, 4, 256>}, {transform_indices = @transform_5, window_bounds = array<i64: 1, 1, 8, 256>}]} {
    %c0 = arith.constant 0 : index
    %c0_0 = arith.constant 0 : index
    %0 = vector.load %arg4[%c0, %c0_0] : memref<128x256xbf16, #tpu.memory_space<vmem>>, vector<128x256xbf16>
    %c0_1 = arith.constant 0 : index
    %c0_2 = arith.constant 0 : index
    %1 = vector.load %arg5[%c0_1, %c0_2] : memref<1x256xf32, #tpu.memory_space<vmem>>, vector<1x256xf32>
    %c0_3 = arith.constant 0 : index
    %c0_4 = arith.constant 0 : index
    %c0_5 = arith.constant 0 : index
    %2 = vector.load %arg2[%c0_3, %c0_4, %c0_5] : memref<1x4x512xbf16, #tpu.memory_space<vmem>>, vector<1x4x128xbf16>
    %3 = vector.shape_cast %2 : vector<1x4x128xbf16> to vector<4x128xbf16>
    %c0_6 = arith.constant 0 : index
    %c0_7 = arith.constant 0 : index
    %c128 = arith.constant 128 : index
    %4 = vector.load %arg2[%c0_6, %c0_7, %c128] : memref<1x4x512xbf16, #tpu.memory_space<vmem>>, vector<1x4x128xbf16>
    %5 = vector.shape_cast %4 : vector<1x4x128xbf16> to vector<4x128xbf16>
    %c0_8 = arith.constant 0 : index
    %c0_9 = arith.constant 0 : index
    %c256 = arith.constant 256 : index
    %6 = vector.load %arg2[%c0_8, %c0_9, %c256] : memref<1x4x512xbf16, #tpu.memory_space<vmem>>, vector<1x4x128xbf16>
    %7 = vector.shape_cast %6 : vector<1x4x128xbf16> to vector<4x128xbf16>
    %c0_10 = arith.constant 0 : index
    %c0_11 = arith.constant 0 : index
    %c384 = arith.constant 384 : index
    %8 = vector.load %arg2[%c0_10, %c0_11, %c384] : memref<1x4x512xbf16, #tpu.memory_space<vmem>>, vector<1x4x128xbf16>
    %9 = vector.shape_cast %8 : vector<1x4x128xbf16> to vector<4x128xbf16>
    %cst = arith.constant dense<0.000000e+00> : vector<4x256xf32>
    %10 = tpu.matmul %3, %0, %cst {dimension_numbers = #tpu.dot_dimension_numbers<[1], [0], [0], [1], [0, 0, 1, 1], [], []>} : vector<4x128xbf16>, vector<128x256xbf16>, vector<4x256xf32> -> vector<4x256xf32>
    %11 = vector.broadcast %1 : vector<1x256xf32> to vector<4x256xf32>
    %12 = arith.addf %10, %11 : vector<4x256xf32>
    %13 = arith.mulf %12, %12 : vector<4x256xf32>
    %14 = arith.mulf %12, %13 : vector<4x256xf32>
    %cst_12 = arith.constant 4.471500e-02 : f32
    %15 = vector.broadcast %cst_12 : f32 to vector<4x256xf32>
    %16 = arith.mulf %15, %14 : vector<4x256xf32>
    %17 = arith.addf %12, %16 : vector<4x256xf32>
    %cst_13 = arith.constant 0.797884583 : f32
    %18 = vector.broadcast %cst_13 : f32 to vector<4x256xf32>
    %19 = arith.mulf %18, %17 : vector<4x256xf32>
    %20 = math.tanh %19 : vector<4x256xf32>
    %cst_14 = arith.constant 1.000000e+00 : f32
    %21 = vector.broadcast %cst_14 : f32 to vector<4x256xf32>
    %22 = arith.addf %21, %20 : vector<4x256xf32>
    %cst_15 = arith.constant 5.000000e-01 : f32
    %23 = vector.broadcast %cst_15 : f32 to vector<4x256xf32>
    %24 = arith.mulf %23, %22 : vector<4x256xf32>
    %25 = arith.mulf %12, %24 : vector<4x256xf32>
    %cst_16 = arith.constant dense<0.000000e+00> : vector<4x256xf32>
    %26 = tpu.matmul %5, %0, %cst_16 {dimension_numbers = #tpu.dot_dimension_numbers<[1], [0], [0], [1], [0, 0, 1, 1], [], []>} : vector<4x128xbf16>, vector<128x256xbf16>, vector<4x256xf32> -> vector<4x256xf32>
    %27 = vector.broadcast %1 : vector<1x256xf32> to vector<4x256xf32>
    %28 = arith.addf %26, %27 : vector<4x256xf32>
    %29 = arith.mulf %28, %28 : vector<4x256xf32>
    %30 = arith.mulf %28, %29 : vector<4x256xf32>
    %cst_17 = arith.constant 4.471500e-02 : f32
    %31 = vector.broadcast %cst_17 : f32 to vector<4x256xf32>
    %32 = arith.mulf %31, %30 : vector<4x256xf32>
    %33 = arith.addf %28, %32 : vector<4x256xf32>
    %cst_18 = arith.constant 0.797884583 : f32
    %34 = vector.broadcast %cst_18 : f32 to vector<4x256xf32>
    %35 = arith.mulf %34, %33 : vector<4x256xf32>
    %36 = math.tanh %35 : vector<4x256xf32>
    %cst_19 = arith.constant 1.000000e+00 : f32
    %37 = vector.broadcast %cst_19 : f32 to vector<4x256xf32>
    %38 = arith.addf %37, %36 : vector<4x256xf32>
    %cst_20 = arith.constant 5.000000e-01 : f32
    %39 = vector.broadcast %cst_20 : f32 to vector<4x256xf32>
    %40 = arith.mulf %39, %38 : vector<4x256xf32>
    %41 = arith.mulf %28, %40 : vector<4x256xf32>
    %42 = arith.addf %25, %41 : vector<4x256xf32>
    %cst_21 = arith.constant dense<0.000000e+00> : vector<4x256xf32>
    %43 = tpu.matmul %7, %0, %cst_21 {dimension_numbers = #tpu.dot_dimension_numbers<[1], [0], [0], [1], [0, 0, 1, 1], [], []>} : vector<4x128xbf16>, vector<128x256xbf16>, vector<4x256xf32> -> vector<4x256xf32>
    %44 = vector.broadcast %1 : vector<1x256xf32> to vector<4x256xf32>
    %45 = arith.addf %43, %44 : vector<4x256xf32>
    %46 = arith.mulf %45, %45 : vector<4x256xf32>
    %47 = arith.mulf %45, %46 : vector<4x256xf32>
    %cst_22 = arith.constant 4.471500e-02 : f32
    %48 = vector.broadcast %cst_22 : f32 to vector<4x256xf32>
    %49 = arith.mulf %48, %47 : vector<4x256xf32>
    %50 = arith.addf %45, %49 : vector<4x256xf32>
    %cst_23 = arith.constant 0.797884583 : f32
    %51 = vector.broadcast %cst_23 : f32 to vector<4x256xf32>
    %52 = arith.mulf %51, %50 : vector<4x256xf32>
    %53 = math.tanh %52 : vector<4x256xf32>
    %cst_24 = arith.constant 1.000000e+00 : f32
    %54 = vector.broadcast %cst_24 : f32 to vector<4x256xf32>
    %55 = arith.addf %54, %53 : vector<4x256xf32>
    %cst_25 = arith.constant 5.000000e-01 : f32
    %56 = vector.broadcast %cst_25 : f32 to vector<4x256xf32>
    %57 = arith.mulf %56, %55 : vector<4x256xf32>
    %58 = arith.mulf %45, %57 : vector<4x256xf32>
    %59 = arith.addf %42, %58 : vector<4x256xf32>
    %cst_26 = arith.constant dense<0.000000e+00> : vector<4x256xf32>
    %60 = tpu.matmul %9, %0, %cst_26 {dimension_numbers = #tpu.dot_dimension_numbers<[1], [0], [0], [1], [0, 0, 1, 1], [], []>} : vector<4x128xbf16>, vector<128x256xbf16>, vector<4x256xf32> -> vector<4x256xf32>
    %61 = vector.broadcast %1 : vector<1x256xf32> to vector<4x256xf32>
    %62 = arith.addf %60, %61 : vector<4x256xf32>
    %63 = arith.mulf %62, %62 : vector<4x256xf32>
    %64 = arith.mulf %62, %63 : vector<4x256xf32>
    %cst_27 = arith.constant 4.471500e-02 : f32
    %65 = vector.broadcast %cst_27 : f32 to vector<4x256xf32>
    %66 = arith.mulf %65, %64 : vector<4x256xf32>
    %67 = arith.addf %62, %66 : vector<4x256xf32>
    %cst_28 = arith.constant 0.797884583 : f32
    %68 = vector.broadcast %cst_28 : f32 to vector<4x256xf32>
    %69 = arith.mulf %68, %67 : vector<4x256xf32>
    %70 = math.tanh %69 : vector<4x256xf32>
    %cst_29 = arith.constant 1.000000e+00 : f32
    %71 = vector.broadcast %cst_29 : f32 to vector<4x256xf32>
    %72 = arith.addf %71, %70 : vector<4x256xf32>
    %cst_30 = arith.constant 5.000000e-01 : f32
    %73 = vector.broadcast %cst_30 : f32 to vector<4x256xf32>
    %74 = arith.mulf %73, %72 : vector<4x256xf32>
    %75 = arith.mulf %62, %74 : vector<4x256xf32>
    %76 = arith.addf %59, %75 : vector<4x256xf32>
    %c0_31 = arith.constant 0 : index
    %c0_32 = arith.constant 0 : index
    %c0_33 = arith.constant 0 : index
    %77 = vector.load %arg3[%c0_31, %c0_32, %c0_33] : memref<1x1x256xf32, #tpu.memory_space<vmem>>, vector<1x1x256xf32>
    %78 = vector.shape_cast %77 : vector<1x1x256xf32> to vector<1x256xf32>
    %79 = vector.broadcast %78 : vector<1x256xf32> to vector<4x256xf32>
    %80 = arith.mulf %76, %79 : vector<4x256xf32>
    %81 = arith.truncf %80 : vector<4x256xf32> to vector<4x256xbf16>
    %c0_34 = arith.constant 0 : index
    %c0_35 = arith.constant 0 : index
    %c0_36 = arith.constant 0 : index
    %82 = vector.load %arg6[%c0_34, %c0_35, %c0_36] : memref<1x4x256xbf16, #tpu.memory_space<vmem>>, vector<1x4x256xbf16>
    %83 = vector.shape_cast %82 : vector<1x4x256xbf16> to vector<4x256xbf16>
    %84 = vector.shape_cast %81 : vector<4x256xbf16> to vector<1x4x256xbf16>
    tpu.vector_store %arg6[%c0_34, %c0_35, %c0_36], %84 {strides = array<i32>} : memref<1x4x256xbf16, #tpu.memory_space<vmem>>, vector<1x4x256xbf16>,
    %cst_37 = arith.constant dense<0.000000e+00> : vector<256xf32>
    %85 = vector.multi_reduction <add>, %80, %cst_37 [0] : vector<4x256xf32> to vector<256xf32>
    %86 = vector.shape_cast %85 : vector<256xf32> to vector<1x256xf32>
    %87 = vector.shape_cast %86 : vector<1x256xf32> to vector<1x256xf32>
    %88 = vector.broadcast %87 : vector<1x256xf32> to vector<8x256xf32>
    %c0_38 = arith.constant 0 : index
    %c0_39 = arith.constant 0 : index
    %c0_40 = arith.constant 0 : index
    %c0_41 = arith.constant 0 : index
    %89 = vector.load %arg7[%c0_38, %c0_39, %c0_40, %c0_41] : memref<1x1x8x256xf32, #tpu.memory_space<vmem>>, vector<1x1x8x256xf32>
    %90 = vector.shape_cast %89 : vector<1x1x8x256xf32> to vector<8x256xf32>
    %91 = vector.shape_cast %88 : vector<8x256xf32> to vector<1x1x8x256xf32>
    tpu.vector_store %arg7[%c0_38, %c0_39, %c0_40, %c0_41], %91 {strides = array<i32>} : memref<1x1x8x256xf32, #tpu.memory_space<vmem>>, vector<1x1x8x256xf32>,
    return
  }
  func.func @transform_0(%arg0: i32, %arg1: i32) -> (i32, i32, i32) {
    %c0_i32 = arith.constant 0 : i32
    %c0_i32_0 = arith.constant 0 : i32
    return %arg0, %arg1, %c0_i32 : i32, i32, i32
  }
  func.func @transform_1(%arg0: i32, %arg1: i32) -> (i32, i32, i32) {
    %c0_i32 = arith.constant 0 : i32
    %c0_i32_0 = arith.constant 0 : i32
    %c0_i32_1 = arith.constant 0 : i32
    return %arg0, %c0_i32, %c0_i32_0 : i32, i32, i32
  }
  func.func @transform_2(%arg0: i32, %arg1: i32) -> (i32, i32) {
    %c0_i32 = arith.constant 0 : i32
    %c0_i32_0 = arith.constant 0 : i32
    %c0_i32_1 = arith.constant 0 : i32
    return %c0_i32, %c0_i32_0 : i32, i32
  }
  func.func @transform_3(%arg0: i32, %arg1: i32) -> (i32, i32) {
    %c0_i32 = arith.constant 0 : i32
    %c0_i32_0 = arith.constant 0 : i32
    %c0_i32_1 = arith.constant 0 : i32
    return %c0_i32, %c0_i32_0 : i32, i32
  }
  func.func @transform_4(%arg0: i32, %arg1: i32) -> (i32, i32, i32) {
    %c0_i32 = arith.constant 0 : i32
    %c0_i32_0 = arith.constant 0 : i32
    return %arg0, %arg1, %c0_i32 : i32, i32, i32
  }
  func.func @transform_5(%arg0: i32, %arg1: i32) -> (i32, i32, i32, i32) {
    %c0_i32 = arith.constant 0 : i32
    %c0_i32_0 = arith.constant 0 : i32
    %c0_i32_1 = arith.constant 0 : i32
    return %arg0, %arg1, %c0_i32, %c0_i32_0 : i32, i32, i32, i32
  }
}

module attributes {stable_mosaic.version = 11 : i64} {
  func.func @sfne_block_kernel(%arg0: i32, %arg1: i32, %arg2: memref<1x1x1024xbf16, #tpu.memory_space<vmem>>, %arg3: memref<1x1x512xf32, #tpu.memory_space<vmem>>, %arg4: memref<256x512xbf16, #tpu.memory_space<vmem>>, %arg5: memref<1x512xf32, #tpu.memory_space<vmem>>, %arg6: memref<1x1x512xbf16, #tpu.memory_space<vmem>>, %arg7: memref<1x1x8x512xf32, #tpu.memory_space<vmem>>) attributes {dimension_semantics = [#tpu.dimension_semantics<parallel>, #tpu.dimension_semantics<parallel>], iteration_bounds = array<i64: 2, 1>, scalar_prefetch = 0 : i64, scratch_operands = 0 : i64, tpu.core_type = #tpu.core_type<tc>, window_params = [{transform_indices = @transform_0, window_bounds = array<i64: 1, 1, 1024>}, {transform_indices = @transform_1, window_bounds = array<i64: 1, 1, 512>}, {pipeline_mode = #tpu.pipeline_mode<synchronous>, transform_indices = @transform_2, window_bounds = array<i64: 256, 512>}, {pipeline_mode = #tpu.pipeline_mode<synchronous>, transform_indices = @transform_3, window_bounds = array<i64: 1, 512>}, {transform_indices = @transform_4, window_bounds = array<i64: 1, 1, 512>}, {transform_indices = @transform_5, window_bounds = array<i64: 1, 1, 8, 512>}]} {
    %c0 = arith.constant 0 : index
    %c0_0 = arith.constant 0 : index
    %0 = vector.load %arg4[%c0, %c0_0] : memref<256x512xbf16, #tpu.memory_space<vmem>>, vector<256x512xbf16>
    %c0_1 = arith.constant 0 : index
    %c0_2 = arith.constant 0 : index
    %1 = vector.load %arg5[%c0_1, %c0_2] : memref<1x512xf32, #tpu.memory_space<vmem>>, vector<1x512xf32>
    %c0_3 = arith.constant 0 : index
    %c0_4 = arith.constant 0 : index
    %c0_5 = arith.constant 0 : index
    %2 = vector.load %arg2[%c0_3, %c0_4, %c0_5] : memref<1x1x1024xbf16, #tpu.memory_space<vmem>>, vector<1x1x256xbf16>
    %3 = vector.shape_cast %2 : vector<1x1x256xbf16> to vector<1x256xbf16>
    %c0_6 = arith.constant 0 : index
    %c0_7 = arith.constant 0 : index
    %c256 = arith.constant 256 : index
    %4 = vector.load %arg2[%c0_6, %c0_7, %c256] : memref<1x1x1024xbf16, #tpu.memory_space<vmem>>, vector<1x1x256xbf16>
    %5 = vector.shape_cast %4 : vector<1x1x256xbf16> to vector<1x256xbf16>
    %c0_8 = arith.constant 0 : index
    %c0_9 = arith.constant 0 : index
    %c512 = arith.constant 512 : index
    %6 = vector.load %arg2[%c0_8, %c0_9, %c512] : memref<1x1x1024xbf16, #tpu.memory_space<vmem>>, vector<1x1x256xbf16>
    %7 = vector.shape_cast %6 : vector<1x1x256xbf16> to vector<1x256xbf16>
    %c0_10 = arith.constant 0 : index
    %c0_11 = arith.constant 0 : index
    %c768 = arith.constant 768 : index
    %8 = vector.load %arg2[%c0_10, %c0_11, %c768] : memref<1x1x1024xbf16, #tpu.memory_space<vmem>>, vector<1x1x256xbf16>
    %9 = vector.shape_cast %8 : vector<1x1x256xbf16> to vector<1x256xbf16>
    %cst = arith.constant dense<0.000000e+00> : vector<1x512xf32>
    %10 = tpu.matmul %3, %0, %cst {dimension_numbers = #tpu.dot_dimension_numbers<[1], [0], [0], [1], [0, 0, 1, 1], [], []>} : vector<1x256xbf16>, vector<256x512xbf16>, vector<1x512xf32> -> vector<1x512xf32>
    %11 = arith.addf %10, %1 : vector<1x512xf32>
    %12 = arith.mulf %11, %11 : vector<1x512xf32>
    %13 = arith.mulf %11, %12 : vector<1x512xf32>
    %cst_12 = arith.constant 4.471500e-02 : f32
    %14 = vector.broadcast %cst_12 : f32 to vector<1x512xf32>
    %15 = arith.mulf %14, %13 : vector<1x512xf32>
    %16 = arith.addf %11, %15 : vector<1x512xf32>
    %cst_13 = arith.constant 0.797884583 : f32
    %17 = vector.broadcast %cst_13 : f32 to vector<1x512xf32>
    %18 = arith.mulf %17, %16 : vector<1x512xf32>
    %19 = math.tanh %18 : vector<1x512xf32>
    %cst_14 = arith.constant 1.000000e+00 : f32
    %20 = vector.broadcast %cst_14 : f32 to vector<1x512xf32>
    %21 = arith.addf %20, %19 : vector<1x512xf32>
    %cst_15 = arith.constant 5.000000e-01 : f32
    %22 = vector.broadcast %cst_15 : f32 to vector<1x512xf32>
    %23 = arith.mulf %22, %21 : vector<1x512xf32>
    %24 = arith.mulf %11, %23 : vector<1x512xf32>
    %cst_16 = arith.constant dense<0.000000e+00> : vector<1x512xf32>
    %25 = tpu.matmul %5, %0, %cst_16 {dimension_numbers = #tpu.dot_dimension_numbers<[1], [0], [0], [1], [0, 0, 1, 1], [], []>} : vector<1x256xbf16>, vector<256x512xbf16>, vector<1x512xf32> -> vector<1x512xf32>
    %26 = arith.addf %25, %1 : vector<1x512xf32>
    %27 = arith.mulf %26, %26 : vector<1x512xf32>
    %28 = arith.mulf %26, %27 : vector<1x512xf32>
    %cst_17 = arith.constant 4.471500e-02 : f32
    %29 = vector.broadcast %cst_17 : f32 to vector<1x512xf32>
    %30 = arith.mulf %29, %28 : vector<1x512xf32>
    %31 = arith.addf %26, %30 : vector<1x512xf32>
    %cst_18 = arith.constant 0.797884583 : f32
    %32 = vector.broadcast %cst_18 : f32 to vector<1x512xf32>
    %33 = arith.mulf %32, %31 : vector<1x512xf32>
    %34 = math.tanh %33 : vector<1x512xf32>
    %cst_19 = arith.constant 1.000000e+00 : f32
    %35 = vector.broadcast %cst_19 : f32 to vector<1x512xf32>
    %36 = arith.addf %35, %34 : vector<1x512xf32>
    %cst_20 = arith.constant 5.000000e-01 : f32
    %37 = vector.broadcast %cst_20 : f32 to vector<1x512xf32>
    %38 = arith.mulf %37, %36 : vector<1x512xf32>
    %39 = arith.mulf %26, %38 : vector<1x512xf32>
    %40 = arith.addf %24, %39 : vector<1x512xf32>
    %cst_21 = arith.constant dense<0.000000e+00> : vector<1x512xf32>
    %41 = tpu.matmul %7, %0, %cst_21 {dimension_numbers = #tpu.dot_dimension_numbers<[1], [0], [0], [1], [0, 0, 1, 1], [], []>} : vector<1x256xbf16>, vector<256x512xbf16>, vector<1x512xf32> -> vector<1x512xf32>
    %42 = arith.addf %41, %1 : vector<1x512xf32>
    %43 = arith.mulf %42, %42 : vector<1x512xf32>
    %44 = arith.mulf %42, %43 : vector<1x512xf32>
    %cst_22 = arith.constant 4.471500e-02 : f32
    %45 = vector.broadcast %cst_22 : f32 to vector<1x512xf32>
    %46 = arith.mulf %45, %44 : vector<1x512xf32>
    %47 = arith.addf %42, %46 : vector<1x512xf32>
    %cst_23 = arith.constant 0.797884583 : f32
    %48 = vector.broadcast %cst_23 : f32 to vector<1x512xf32>
    %49 = arith.mulf %48, %47 : vector<1x512xf32>
    %50 = math.tanh %49 : vector<1x512xf32>
    %cst_24 = arith.constant 1.000000e+00 : f32
    %51 = vector.broadcast %cst_24 : f32 to vector<1x512xf32>
    %52 = arith.addf %51, %50 : vector<1x512xf32>
    %cst_25 = arith.constant 5.000000e-01 : f32
    %53 = vector.broadcast %cst_25 : f32 to vector<1x512xf32>
    %54 = arith.mulf %53, %52 : vector<1x512xf32>
    %55 = arith.mulf %42, %54 : vector<1x512xf32>
    %56 = arith.addf %40, %55 : vector<1x512xf32>
    %cst_26 = arith.constant dense<0.000000e+00> : vector<1x512xf32>
    %57 = tpu.matmul %9, %0, %cst_26 {dimension_numbers = #tpu.dot_dimension_numbers<[1], [0], [0], [1], [0, 0, 1, 1], [], []>} : vector<1x256xbf16>, vector<256x512xbf16>, vector<1x512xf32> -> vector<1x512xf32>
    %58 = arith.addf %57, %1 : vector<1x512xf32>
    %59 = arith.mulf %58, %58 : vector<1x512xf32>
    %60 = arith.mulf %58, %59 : vector<1x512xf32>
    %cst_27 = arith.constant 4.471500e-02 : f32
    %61 = vector.broadcast %cst_27 : f32 to vector<1x512xf32>
    %62 = arith.mulf %61, %60 : vector<1x512xf32>
    %63 = arith.addf %58, %62 : vector<1x512xf32>
    %cst_28 = arith.constant 0.797884583 : f32
    %64 = vector.broadcast %cst_28 : f32 to vector<1x512xf32>
    %65 = arith.mulf %64, %63 : vector<1x512xf32>
    %66 = math.tanh %65 : vector<1x512xf32>
    %cst_29 = arith.constant 1.000000e+00 : f32
    %67 = vector.broadcast %cst_29 : f32 to vector<1x512xf32>
    %68 = arith.addf %67, %66 : vector<1x512xf32>
    %cst_30 = arith.constant 5.000000e-01 : f32
    %69 = vector.broadcast %cst_30 : f32 to vector<1x512xf32>
    %70 = arith.mulf %69, %68 : vector<1x512xf32>
    %71 = arith.mulf %58, %70 : vector<1x512xf32>
    %72 = arith.addf %56, %71 : vector<1x512xf32>
    %c0_31 = arith.constant 0 : index
    %c0_32 = arith.constant 0 : index
    %c0_33 = arith.constant 0 : index
    %73 = vector.load %arg3[%c0_31, %c0_32, %c0_33] : memref<1x1x512xf32, #tpu.memory_space<vmem>>, vector<1x1x512xf32>
    %74 = vector.shape_cast %73 : vector<1x1x512xf32> to vector<1x512xf32>
    %75 = arith.mulf %72, %74 : vector<1x512xf32>
    %76 = arith.truncf %75 : vector<1x512xf32> to vector<1x512xbf16>
    %c0_34 = arith.constant 0 : index
    %c0_35 = arith.constant 0 : index
    %c0_36 = arith.constant 0 : index
    %77 = vector.load %arg6[%c0_34, %c0_35, %c0_36] : memref<1x1x512xbf16, #tpu.memory_space<vmem>>, vector<1x1x512xbf16>
    %78 = vector.shape_cast %77 : vector<1x1x512xbf16> to vector<1x512xbf16>
    %79 = vector.shape_cast %76 : vector<1x512xbf16> to vector<1x1x512xbf16>
    tpu.vector_store %arg6[%c0_34, %c0_35, %c0_36], %79 {strides = array<i32>} : memref<1x1x512xbf16, #tpu.memory_space<vmem>>, vector<1x1x512xbf16>,
    %cst_37 = arith.constant dense<0.000000e+00> : vector<512xf32>
    %80 = vector.multi_reduction <add>, %75, %cst_37 [0] : vector<1x512xf32> to vector<512xf32>
    %81 = vector.shape_cast %80 : vector<512xf32> to vector<1x512xf32>
    %82 = vector.shape_cast %81 : vector<1x512xf32> to vector<1x512xf32>
    %83 = vector.broadcast %82 : vector<1x512xf32> to vector<8x512xf32>
    %c0_38 = arith.constant 0 : index
    %c0_39 = arith.constant 0 : index
    %c0_40 = arith.constant 0 : index
    %c0_41 = arith.constant 0 : index
    %84 = vector.load %arg7[%c0_38, %c0_39, %c0_40, %c0_41] : memref<1x1x8x512xf32, #tpu.memory_space<vmem>>, vector<1x1x8x512xf32>
    %85 = vector.shape_cast %84 : vector<1x1x8x512xf32> to vector<8x512xf32>
    %86 = vector.shape_cast %83 : vector<8x512xf32> to vector<1x1x8x512xf32>
    tpu.vector_store %arg7[%c0_38, %c0_39, %c0_40, %c0_41], %86 {strides = array<i32>} : memref<1x1x8x512xf32, #tpu.memory_space<vmem>>, vector<1x1x8x512xf32>,
    return
  }
  func.func @transform_0(%arg0: i32, %arg1: i32) -> (i32, i32, i32) {
    %c0_i32 = arith.constant 0 : i32
    %c0_i32_0 = arith.constant 0 : i32
    return %arg0, %arg1, %c0_i32 : i32, i32, i32
  }
  func.func @transform_1(%arg0: i32, %arg1: i32) -> (i32, i32, i32) {
    %c0_i32 = arith.constant 0 : i32
    %c0_i32_0 = arith.constant 0 : i32
    %c0_i32_1 = arith.constant 0 : i32
    return %arg0, %c0_i32, %c0_i32_0 : i32, i32, i32
  }
  func.func @transform_2(%arg0: i32, %arg1: i32) -> (i32, i32) {
    %c0_i32 = arith.constant 0 : i32
    %c0_i32_0 = arith.constant 0 : i32
    %c0_i32_1 = arith.constant 0 : i32
    return %c0_i32, %c0_i32_0 : i32, i32
  }
  func.func @transform_3(%arg0: i32, %arg1: i32) -> (i32, i32) {
    %c0_i32 = arith.constant 0 : i32
    %c0_i32_0 = arith.constant 0 : i32
    %c0_i32_1 = arith.constant 0 : i32
    return %c0_i32, %c0_i32_0 : i32, i32
  }
  func.func @transform_4(%arg0: i32, %arg1: i32) -> (i32, i32, i32) {
    %c0_i32 = arith.constant 0 : i32
    %c0_i32_0 = arith.constant 0 : i32
    return %arg0, %arg1, %c0_i32 : i32, i32, i32
  }
  func.func @transform_5(%arg0: i32, %arg1: i32) -> (i32, i32, i32, i32) {
    %c0_i32 = arith.constant 0 : i32
    %c0_i32_0 = arith.constant 0 : i32
    %c0_i32_1 = arith.constant 0 : i32
    return %arg0, %arg1, %c0_i32, %c0_i32_0 : i32, i32, i32, i32
  }
}

</mosaic_0001>

<bundles_post_ra>
// kernel: terminator_forward.3
= control target key start
LH: loop header
LB: loop body
LE: loop exit
PB: predicated region body
PF: predicated region fallthrough
CT: control target
= control target key end

     0   :  { %s864_s18 = smov 0   ;;  %s866_s19 = smov 0   ;;  %s986_s0 = inlined_call_operand.vmem [shape: bf16[2,16,512], index: 0, kind: input, shape index: {}]   ;;  %s987_s1 = inlined_call_operand.vmem [shape: f32[2,1,128], index: 1, kind: input, shape index: {}]   ;;  %s988_s2 = inlined_call_operand.vmem [shape: bf16[128,128], index: 2, kind: input, shape index: {}]   ;;  %s989_s3 = inlined_call_operand.vmem [shape: f32[1,128], index: 3, kind: input, shape index: {}]   ;;  %s990_s4 = inlined_call_operand.vmem [shape: bf16[2,16,128], index: 4, kind: output, shape index: {0}]   ;;  %s991_s5 = inlined_call_operand.vmem [shape: f32[2,1,8,128], index: 5, kind: output, shape index: {1}]  }
   0x1   :  { %s868_s20 = smov 0  }
   0x2 LB: > { %s28_s21 = sadd.s32 1, %s828_s19  ;;  %p669_p0 = scmp.ge.s32.totalorder %s832_s20, 1  ;;  %s832_s20 = sphi %s868_s20, %s16_s20   ;;  %s828_s19 = sphi %s866_s19, %s993_s19   ;;  %s824_s18 = sphi %s864_s18, %s992_s18  }
   0x3   : > { %p30_p1 = scmp.ge.s32.totalorder %s28_s21, 2  ;;  %p222_p2 = scmp.lt.s32.totalorder %s832_s20, 3 }
   0x5   : > { %s995_s21 = smov (%p30_p1, %s28_s21), 0  ;;  %p223_p3 = pnand %p669_p0, %p222_p2 }
   0x6   : > { %p270_p4 = scmp.lt.s32.totalorder (!%p223_p3), %s824_s18, 1 }
   0x7   : > { %226 = sbr.rel (%p223_p3) target bundleno = 231 (0xe7), region = 36 }
   0xc   : > { %v734_v0 = vld [vmem:[%s988_s2 + $0x38] sm:$0xff]  ;;  %v733_v1 = vld [vmem:[%s988_s2 + $0x30] sm:$0xff]  ;;  %v732_v2 = vld [vmem:[%s988_s2 + $0x28] sm:$0xff]  ;;  %s997_s18 = smov (!%p270_p4, %s824_s18), 1 }
   0xd   : > { %400 = vmatpush.bf16.msra.mxu0 %v734_v0  ;;  %744 = vmatpush.bf16.msra.mxu1 %v734_v0  ;;  %v731_v3 = vld [vmem:[%s988_s2 + $0x20] sm:$0xff]  ;;  %v730_v4 = vld [vmem:[%s988_s2 + $0x18] sm:$0xff]  ;;  %v729_v5 = vld [vmem:[%s988_s2 + $0x10] sm:$0xff]  ;;  %s725_s9 = sshll.u32 %s997_s18, 5  ;;  %s282_s23 = scalar_lea.vmem %s987_s1, %s997_s18 }
   0xe   : > { %745 = vmatpush.bf16.msra.mxu2 %v734_v0  ;;  %746 = vmatpush.bf16.msra.mxu3 %v734_v0  ;;  %v728_v6 = vld [vmem:[%s988_s2 + $0x8] sm:$0xff]  ;;  %s278_s14 = scalar_lea.vmem %s986_s0, %s725_s9  ;;  %v727_v7 = vld [vmem:[%s988_s2] sm:$0xff]  ;;  %s726_s28 = sshll.u32 %s997_s18, 3 }
   0xf   : > { %v677_v8 = vld [vmem:[%s278_s14] sm:$0xf]  ;;  %v735_v9 = vld [vmem:[%s278_s14 + $0xc] sm:$0xf0]  ;;  %v681_v10 = vld [vmem:[%s278_s14 + $0x4] sm:$0xf]  ;;  %s291_s6 = scalar_lea.vmem %s990_s4, %s726_s28  ;;  %s299_s9 = scalar_lea.vmem %s991_s5, %s726_s28 }
  0x10   : > { %v736_v11 = vld [vmem:[%s278_s14 + $0x10] sm:$0xf0]  ;;  %v685_v12 = vld [vmem:[%s278_s14 + $0x8] sm:$0xf]  ;;  %v737_v13 = vld [vmem:[%s278_s14 + $0x14] sm:$0xf0]  ;;  %v678_v16 = vor.u32 %v735_v9, %v677_v8 }
  0x11   : > { %401 = vmatpush.bf16.msra.mxu0 %v733_v1  ;;  %747 = vmatpush.bf16.msra.mxu1 %v733_v1  ;;  %v689_v14 = vld [vmem:[%s278_s14 + $0xc] sm:$0xf]  ;;  %v738_v15 = vld [vmem:[%s278_s14 + $0x18] sm:$0xf0]  ;;  %v682_v17 = vor.u32 %v736_v11, %v681_v10  ;;  %v686_v18 = vor.u32 %v737_v13, %v685_v12  ;;  %v792_v20 = vld [vmem:[%s989_s3] ss:$0 sm:$0xff] }
  0x12   : > { %748 = vmatpush.bf16.msra.mxu2 %v733_v1  ;;  %749 = vmatpush.bf16.msra.mxu3 %v733_v1  ;;  %v690_v19 = vor.u32 %v738_v15, %v689_v14 }
  0x15   : > { %402 = vmatpush.bf16.msra.mxu0 %v732_v2  ;;  %750 = vmatpush.bf16.msra.mxu1 %v732_v2 }
  0x16   : > { %751 = vmatpush.bf16.msra.mxu2 %v732_v2  ;;  %752 = vmatpush.bf16.msra.mxu3 %v732_v2 }
  0x19   : > { %403 = vmatpush.bf16.msra.mxu0 %v731_v3  ;;  %753 = vmatpush.bf16.msra.mxu1 %v731_v3 }
  0x1a   : > { %754 = vmatpush.bf16.msra.mxu2 %v731_v3  ;;  %755 = vmatpush.bf16.msra.mxu3 %v731_v3 }
  0x1d   : > { %404 = vmatpush.bf16.msra.mxu0 %v730_v4  ;;  %756 = vmatpush.bf16.msra.mxu1 %v730_v4 }
  0x1e   : > { %757 = vmatpush.bf16.msra.mxu2 %v730_v4  ;;  %758 = vmatpush.bf16.msra.mxu3 %v730_v4 }
  0x21   : > { %405 = vmatpush.bf16.msra.mxu0 %v729_v5  ;;  %759 = vmatpush.bf16.msra.mxu1 %v729_v5 }
  0x22   : > { %760 = vmatpush.bf16.msra.mxu2 %v729_v5  ;;  %761 = vmatpush.bf16.msra.mxu3 %v729_v5 }
  0x25   : > { %406 = vmatpush.bf16.msra.mxu0 %v728_v6  ;;  %762 = vmatpush.bf16.msra.mxu1 %v728_v6 }
  0x26   : > { %763 = vmatpush.bf16.msra.mxu2 %v728_v6  ;;  %764 = vmatpush.bf16.msra.mxu3 %v728_v6 }
  0x29   : > { %407 = vmatpush.bf16.msra.mxu0 %v727_v7  ;;  %765 = vmatpush.bf16.msra.mxu1 %v727_v7 }
  0x2a   : > { %766 = vmatpush.bf16.msra.mxu2 %v727_v7  ;;  %767 = vmatpush.bf16.msra.mxu3 %v727_v7 }
  0x2c   : > { %408 = vmatmul.bf16.vlgmr.msra.gmra.mxu0 %v678_v16  ;;  %413 = vmatmul.bf16.vlgmr.msra.gmra.mxu1 %v682_v17 }
  0x2d   : > { %418 = vmatmul.bf16.vlgmr.msra.gmra.mxu2 %v686_v18  ;;  %423 = vmatmul.bf16.vlgmr.msra.gmra.mxu3 %v690_v19 }
  0xa9   : > { %v409_v21 = vpop.f32.mrf.mxu0  ;;  %v414_v22 = vpop.f32.mrf.mxu1 }
  0xaa   : > { %v923_v23 = vadd.f32 %v792_v20, %v409_v21  ;;  %v925_v24 = vadd.f32 %v792_v20, %v414_v22 }
  0xac   : > { %v429_v25 = vmul.f32 %v923_v23, %v923_v23  ;;  %v431_v26 = vmul.f32 %v925_v24, %v925_v24 }
  0xae   : > { %v437_v27 = vmul.f32 %v429_v25, %v923_v23  ;;  %v439_v28 = vmul.f32 %v431_v26, %v925_v24 }
  0xb0   : > { %v445_v29 = vmul.f32 0.044715, %v437_v27  ;;  %v447_v30 = vmul.f32 0.044715, %v439_v28  ;;  %v419_v31 = vpop.f32.mrf.mxu2  ;;  %v424_v32 = vpop.f32.mrf.mxu3 }
  0xb1   : > { %v933_v33 = vadd.f32 %v792_v20, %v419_v31  ;;  %v935_v34 = vadd.f32 %v792_v20, %v424_v32  ;;  %v411_v35 = vpop.f32.mrf.mxu0  ;;  %v416_v36 = vpop.f32.mrf.mxu1 }
  0xb2   : > { %v453_v37 = vadd.f32 %v445_v29, %v923_v23  ;;  %v455_v38 = vadd.f32 %v447_v30, %v925_v24  ;;  %v939_v39 = vadd.f32 %v792_v20, %v411_v35  ;;  %v941_v40 = vadd.f32 %v792_v20, %v416_v36 }
  0xb3   : > { %v433_v41 = vmul.f32 %v933_v33, %v933_v33  ;;  %v435_v42 = vmul.f32 %v935_v34, %v935_v34 }
  0xb4   : > { %v461_v43 = vmul.f32 0.7978846, %v453_v37  ;;  %v463_v44 = vmul.f32 0.7978846, %v455_v38  ;;  %v430_v45 = vmul.f32 %v939_v39, %v939_v39  ;;  %v432_v46 = vmul.f32 %v941_v40, %v941_v40 }
  0xb5   : > { %v441_v47 = vmul.f32 %v433_v41, %v933_v33  ;;  %v443_v48 = vmul.f32 %v435_v42, %v935_v34 }
  0xb6   : > { %794 = vtanh.f32 %v461_v43  ;;  %v438_v49 = vmul.f32 %v430_v45, %v939_v39  ;;  %v440_v50 = vmul.f32 %v432_v46, %v941_v40 }
  0xb7   : > { %796 = vtanh.f32 %v463_v44  ;;  %v449_v51 = vmul.f32 0.044715, %v441_v47  ;;  %v451_v52 = vmul.f32 0.044715, %v443_v48 }
  0xb8   : > { %v446_v53 = vmul.f32 0.044715, %v438_v49  ;;  %v448_v54 = vmul.f32 0.044715, %v440_v50  ;;  %v421_v55 = vpop.f32.mrf.mxu2  ;;  %v426_v56 = vpop.f32.mrf.mxu3 }
  0xb9   : > { %v457_v57 = vadd.f32 %v449_v51, %v933_v33  ;;  %v459_v58 = vadd.f32 %v451_v52, %v935_v34  ;;  %v422_v59 = vadd.f32 %v792_v20, %v421_v55  ;;  %v427_v60 = vadd.f32 %v792_v20, %v426_v56  ;;  %v793_v51 = vld [vmem:[%s282_s23] ss:$0 sm:$0xff] }
  0xba   : > { %v454_v61 = vadd.f32 %v446_v53, %v939_v39  ;;  %v456_v62 = vadd.f32 %v448_v54, %v941_v40 }
  0xbb   : > { %v465_v63 = vmul.f32 0.7978846, %v457_v57  ;;  %v467_v0 = vmul.f32 0.7978846, %v459_v58  ;;  %v434_v1 = vmul.f32 %v422_v59, %v422_v59  ;;  %v436_v2 = vmul.f32 %v427_v60, %v427_v60 }
  0xbc   : > { %v795_v3 = vpop.eup %794  ;;  %v462_v4 = vmul.f32 0.7978846, %v454_v61  ;;  %v464_v5 = vmul.f32 0.7978846, %v456_v62 }
  0xbd   : > { %v797_v6 = vpop.eup %796  ;;  %798 = vtanh.f32 %v465_v63  ;;  %v442_v7 = vmul.f32 %v434_v1, %v422_v59  ;;  %v444_v8 = vmul.f32 %v436_v2, %v427_v60  ;;  %v477_v9 = vadd.f32 1.0, %v795_v3 }
  0xbe   : > { %800 = vtanh.f32 %v467_v0  ;;  %v479_v10 = vadd.f32 1.0, %v797_v6 }
  0xbf   : > { %802 = vtanh.f32 %v462_v4  ;;  %v450_v11 = vmul.f32 0.044715, %v442_v7  ;;  %v452_v12 = vmul.f32 0.044715, %v444_v8  ;;  %v485_v16 = vmul.f32 0.5, %v477_v9 }
  0xc0   : > { %804 = vtanh.f32 %v464_v5  ;;  %v487_v17 = vmul.f32 0.5, %v479_v10 }
  0xc1   : > { %v458_v13 = vadd.f32 %v450_v11, %v422_v59  ;;  %v460_v14 = vadd.f32 %v452_v12, %v427_v60  ;;  %v493_v28 = vmul.f32 %v485_v16, %v923_v23 }
  0xc2   : > { %v495_v29 = vmul.f32 %v487_v17, %v925_v24 }
  0xc3   : > { %v799_v15 = vpop.eup %798  ;;  %v466_v18 = vmul.f32 0.7978846, %v458_v13  ;;  %v468_v19 = vmul.f32 0.7978846, %v460_v14 }
  0xc4   : > { %v801_v20 = vpop.eup %800  ;;  %v481_v21 = vadd.f32 1.0, %v799_v15  ;;  %v501_v38 = vadd.f32 %v495_v29, %v493_v28 }
  0xc5   : > { %v803_v22 = vpop.eup %802  ;;  %806 = vtanh.f32 %v466_v18  ;;  %v483_v31 = vadd.f32 1.0, %v801_v20 }
  0xc6   : > { %v805_v25 = vpop.eup %804  ;;  %v489_v26 = vmul.f32 0.5, %v481_v21  ;;  %v478_v27 = vadd.f32 1.0, %v803_v22  ;;  %808 = vtanh.f32 %v468_v19 }
  0xc7   : > { %v480_v30 = vadd.f32 1.0, %v805_v25  ;;  %v491_v42 = vmul.f32 0.5, %v483_v31 }
  0xc8   : > { %v486_v32 = vmul.f32 0.5, %v478_v27  ;;  %v497_v36 = vmul.f32 %v489_v26, %v933_v33 }
  0xc9   : > { %v488_v35 = vmul.f32 0.5, %v480_v30  ;;  %v499_v48 = vmul.f32 %v491_v42, %v935_v34 }
  0xca   : > { %v494_v43 = vmul.f32 %v486_v32, %v939_v39  ;;  %v503_v46 = vadd.f32 %v501_v38, %v497_v36 }
  0xcb   : > { %v807_v37 = vpop.eup %806  ;;  %v496_v44 = vmul.f32 %v488_v35, %v941_v40 }
  0xcc   : > { %v809_v41 = vpop.eup %808  ;;  %v482_v45 = vadd.f32 1.0, %v807_v37  ;;  %v505_v33 = vadd.f32 %v503_v46, %v499_v48 }
  0xcd   : > { %v484_v23 = vadd.f32 1.0, %v809_v41  ;;  %v502_v49 = vadd.f32 %v496_v44, %v494_v43 }
  0xce   : > { %v490_v24 = vmul.f32 0.5, %v482_v45  ;;  %v511_v40 = vmul.f32 %v793_v51, %v505_v33 }
  0xcf   : > { %v492_v47 = vmul.f32 0.5, %v484_v23 }
  0xd0   : > { %v498_v50 = vmul.f32 %v490_v24, %v422_v59 }
  0xd1   : > { %v500_v53 = vmul.f32 %v492_v47, %v427_v60 }
  0xd2   : > { %v504_v52 = vadd.f32 %v502_v49, %v498_v50 }
  0xd4   : > { %v506_v39 = vadd.f32 %v504_v52, %v500_v53 }
  0xd6   : > { %v512_v54 = vmul.f32 %v793_v51, %v506_v39 }
  0xd8   : > { %v742_v55 = vpack.c.bf16 %v512_v54, %v511_v40  ;;  %v517_v34 = vadd.f32 %v512_v54, %v511_v40 }
  0xda   : > { %743 = vst [vmem:[%s291_s6] sm:$0xff] %v742_v55   ;;  %v518_v56 = vrot.slane %v517_v34, 4 }
  0xdc   : > { %v519_v57 = vadd.f32 %v518_v56, %v517_v34 }
  0xde   : > { %v520_v58 = vrot.slane %v519_v57, 2 }
  0xe0   : > { %v521_v59 = vadd.f32 %v520_v58, %v519_v57 }
  0xe2   : > { %v522_v61 = vrot.slane %v521_v59, 1 }
  0xe4   : > { %v523_v60 = vadd.f32 %v522_v61, %v521_v59 }
  0xe6   : > { %524 = vst [vmem:[%s299_s9] sm:$0xff] %v523_v60 }
  0xe7 PF: > { %s16_s20 = sadd.s32 1, %s832_s20   ;;  %s992_s18 = smov %s828_s19 }
  0xe8   : > { %p13_p5 = scmp.ge.s32.totalorder %s16_s20, 4   ;;  %s993_s19 = smov %s995_s21 }
  0xea   :  { %15 = sbr.rel (!%p13_p5) target bundleno = 2 (0x2), region = 81 }

// kernel: terminator_forward.4
= control target key start
LH: loop header
LB: loop body
LE: loop exit
PB: predicated region body
PF: predicated region fallthrough
CT: control target
= control target key end

     0   :  { %s971_s18 = smov 0   ;;  %s973_s19 = smov 0   ;;  %s1241_s0 = inlined_call_operand.vmem [shape: bf16[2,4,512], index: 0, kind: input, shape index: {}]   ;;  %s1242_s1 = inlined_call_operand.vmem [shape: f32[2,1,256], index: 1, kind: input, shape index: {}]   ;;  %s1243_s2 = inlined_call_operand.vmem [shape: bf16[128,256], index: 2, kind: input, shape index: {}]   ;;  %s1244_s3 = inlined_call_operand.vmem [shape: f32[1,256], index: 3, kind: input, shape index: {}]   ;;  %s1245_s4 = inlined_call_operand.vmem [shape: bf16[2,4,256], index: 4, kind: output, shape index: {0}]   ;;  %s1246_s5 = inlined_call_operand.vmem [shape: f32[2,1,8,256], index: 5, kind: output, shape index: {1}]  }
   0x1   :  { %s975_s20 = smov 0  }
   0x2 LB: > { %s28_s21 = sadd.s32 1, %s935_s19  ;;  %p784_p0 = scmp.ge.s32.totalorder %s939_s20, 1  ;;  %s939_s20 = sphi %s975_s20, %s16_s20   ;;  %s935_s19 = sphi %s973_s19, %s1248_s19   ;;  %s931_s18 = sphi %s971_s18, %s1247_s18  }
   0x3   : > { %p30_p1 = scmp.ge.s32.totalorder %s28_s21, 2  ;;  %p221_p2 = scmp.lt.s32.totalorder %s939_s20, 3 }
   0x5   : > { %s1250_s21 = smov (%p30_p1, %s28_s21), 0  ;;  %p222_p3 = pnand %p784_p0, %p221_p2 }
   0x6   : > { %p270_p4 = scmp.lt.s32.totalorder (!%p222_p3), %s931_s18, 1 }
   0x7   : > { %225 = sbr.rel (%p222_p3) target bundleno = 254 (0xfe), region = 36 }
   0xc   : > { %v850_v0 = vld [vmem:[%s1243_s2 + $0x70] sm:$0xf]  ;;  %v876_v1 = vld [vmem:[%s1243_s2 + $0x74] sm:$0xf0]  ;;  %v875_v2 = vld [vmem:[%s1243_s2 + $0x74] sm:$0xf] }
   0xd   : > { %v1000_v3 = vor.u32 %v876_v1, %v850_v0  ;;  %v852_v4 = vld [vmem:[%s1243_s2 + $0x78] sm:$0xf0]  ;;  %v842_v5 = vld [vmem:[%s1243_s2 + $0x60] sm:$0xf]  ;;  %v874_v6 = vld [vmem:[%s1243_s2 + $0x64] sm:$0xf0] }
   0xe   : > { %v1011_v7 = vor.u32 %v875_v2, %v852_v4  ;;  %v873_v8 = vld [vmem:[%s1243_s2 + $0x64] sm:$0xf]  ;;  %v844_v9 = vld [vmem:[%s1243_s2 + $0x68] sm:$0xf0]  ;;  %v1021_v10 = vor.u32 %v874_v6, %v842_v5  ;;  %v834_v12 = vld [vmem:[%s1243_s2 + $0x50] sm:$0xf] }
   0xf   : > { %407 = vmatpush.bf16.msra.mxu0 %v1000_v3  ;;  %451 = vmatpush.bf16.msra.mxu2 %v1000_v3  ;;  %v1025_v11 = vor.u32 %v873_v8, %v844_v9  ;;  %v872_v13 = vld [vmem:[%s1243_s2 + $0x54] sm:$0xf0]  ;;  %v871_v14 = vld [vmem:[%s1243_s2 + $0x54] sm:$0xf]  ;;  %v836_v15 = vld [vmem:[%s1243_s2 + $0x58] sm:$0xf0] }
  0x10   : > { %420 = vmatpush.bf16.msra.mxu1 %v1011_v7  ;;  %464 = vmatpush.bf16.msra.mxu3 %v1011_v7  ;;  %v1041_v16 = vor.u32 %v872_v13, %v834_v12  ;;  %v1045_v17 = vor.u32 %v871_v14, %v836_v15  ;;  %v826_v18 = vld [vmem:[%s1243_s2 + $0x40] sm:$0xf]  ;;  %v870_v19 = vld [vmem:[%s1243_s2 + $0x44] sm:$0xf0]  ;;  %v869_v20 = vld [vmem:[%s1243_s2 + $0x44] sm:$0xf] }
  0x11   : > { %v828_v21 = vld [vmem:[%s1243_s2 + $0x48] sm:$0xf0]  ;;  %v1061_v22 = vor.u32 %v870_v19, %v826_v18  ;;  %v818_v24 = vld [vmem:[%s1243_s2 + $0x30] sm:$0xf]  ;;  %v868_v25 = vld [vmem:[%s1243_s2 + $0x34] sm:$0xf0] }
  0x12   : > { %v1065_v23 = vor.u32 %v869_v20, %v828_v21  ;;  %v867_v26 = vld [vmem:[%s1243_s2 + $0x34] sm:$0xf]  ;;  %v820_v27 = vld [vmem:[%s1243_s2 + $0x38] sm:$0xf0]  ;;  %v1081_v28 = vor.u32 %v868_v25, %v818_v24  ;;  %v810_v30 = vld [vmem:[%s1243_s2 + $0x20] sm:$0xf] }
  0x13   : > { %408 = vmatpush.bf16.msra.mxu0 %v1021_v10  ;;  %452 = vmatpush.bf16.msra.mxu2 %v1021_v10  ;;  %v1085_v29 = vor.u32 %v867_v26, %v820_v27  ;;  %v866_v31 = vld [vmem:[%s1243_s2 + $0x24] sm:$0xf0]  ;;  %v865_v32 = vld [vmem:[%s1243_s2 + $0x24] sm:$0xf]  ;;  %v812_v33 = vld [vmem:[%s1243_s2 + $0x28] sm:$0xf0] }
  0x14   : > { %421 = vmatpush.bf16.msra.mxu1 %v1025_v11  ;;  %465 = vmatpush.bf16.msra.mxu3 %v1025_v11  ;;  %v811_v34 = vor.u32 %v866_v31, %v810_v30  ;;  %v815_v35 = vor.u32 %v865_v32, %v812_v33  ;;  %v802_v36 = vld [vmem:[%s1243_s2 + $0x10] sm:$0xf]  ;;  %v864_v37 = vld [vmem:[%s1243_s2 + $0x14] sm:$0xf0]  ;;  %v863_v38 = vld [vmem:[%s1243_s2 + $0x14] sm:$0xf] }
  0x15   : > { %v804_v39 = vld [vmem:[%s1243_s2 + $0x18] sm:$0xf0]  ;;  %s1252_s18 = smov (!%p270_p4, %s931_s18), 1  ;;  %v803_v40 = vor.u32 %v864_v37, %v802_v36  ;;  %v794_v42 = vld [vmem:[%s1243_s2] sm:$0xf]  ;;  %vm606_vm0 = vcmask 1043456  }
  0x16   : > { %v807_v41 = vor.u32 %v863_v38, %v804_v39  ;;  %v862_v43 = vld [vmem:[%s1243_s2 + $0x4] sm:$0xf0]  ;;  %v861_v44 = vld [vmem:[%s1243_s2 + $0x4] sm:$0xf]  ;;  %v796_v45 = vld [vmem:[%s1243_s2 + $0x8] sm:$0xf0] }
  0x17   : > { %409 = vmatpush.bf16.msra.mxu0 %v1041_v16  ;;  %453 = vmatpush.bf16.msra.mxu2 %v1041_v16  ;;  %s858_s23 = sshll.u32 %s1252_s18, 3  ;;  %v795_v46 = vor.u32 %v862_v43, %v794_v42  ;;  %v799_v47 = vor.u32 %v861_v44, %v796_v45  ;;  %v317_v56 = vld [vmem:[%s1244_s3] sm:$0x3]  ;;  %s787_s29 = sshll.u32 %s1252_s18, 1  ;;  %vm600_vm1 = vcmask 1041408  }
  0x18   : > { %422 = vmatpush.bf16.msra.mxu1 %v1045_v17  ;;  %466 = vmatpush.bf16.msra.mxu3 %v1045_v17  ;;  %s1135_s26 = scalar_lea.vmem %s1241_s0, %s858_s23  ;;  %v323_v59 = vperm.slane %v317_v56, 0  ;;  %v324_v60 = vperm.slane %v317_v56, 1  ;;  %s282_s7 = scalar_lea.vmem %s1242_s1, %s787_s29 }
  0x19   : > { %v318_v48 = vld [vmem:[%s1135_s26] sm:$0x3]  ;;  %v319_v49 = vld [vmem:[%s1135_s26 + $0x2] sm:$0x3]  ;;  %v320_v50 = vld [vmem:[%s1135_s26 + $0x4] sm:$0x3] }
  0x1a   : > { %v321_v51 = vld [vmem:[%s1135_s26 + $0x6] sm:$0x3]  ;;  %s859_s8 = sshll.u32 %s1252_s18, 2  ;;  %s860_s12 = sshll.u32 %s1252_s18, 4 }
  0x1b   : > { %410 = vmatpush.bf16.msra.mxu0 %v1061_v22  ;;  %454 = vmatpush.bf16.msra.mxu2 %v1061_v22  ;;  %s291_s11 = scalar_lea.vmem %s1245_s4, %s859_s8  ;;  %s300_s15 = scalar_lea.vmem %s1246_s5, %s860_s12 }
  0x1c   : > { %423 = vmatpush.bf16.msra.mxu1 %v1065_v23  ;;  %467 = vmatpush.bf16.msra.mxu3 %v1065_v23 }
  0x1f   : > { %411 = vmatpush.bf16.msra.mxu0 %v1081_v28  ;;  %455 = vmatpush.bf16.msra.mxu2 %v1081_v28 }
  0x20   : > { %424 = vmatpush.bf16.msra.mxu1 %v1085_v29  ;;  %468 = vmatpush.bf16.msra.mxu3 %v1085_v29 }
  0x23   : > { %412 = vmatpush.bf16.msra.mxu0 %v811_v34  ;;  %456 = vmatpush.bf16.msra.mxu2 %v811_v34 }
  0x24   : > { %425 = vmatpush.bf16.msra.mxu1 %v815_v35  ;;  %469 = vmatpush.bf16.msra.mxu3 %v815_v35 }
  0x27   : > { %413 = vmatpush.bf16.msra.mxu0 %v803_v40  ;;  %457 = vmatpush.bf16.msra.mxu2 %v803_v40 }
  0x28   : > { %426 = vmatpush.bf16.msra.mxu1 %v807_v41  ;;  %470 = vmatpush.bf16.msra.mxu3 %v807_v41 }
  0x2b   : > { %414 = vmatpush.bf16.msra.mxu0 %v795_v46  ;;  %458 = vmatpush.bf16.msra.mxu2 %v795_v46 }
  0x2c   : > { %427 = vmatpush.bf16.msra.mxu1 %v799_v47  ;;  %471 = vmatpush.bf16.msra.mxu3 %v799_v47 }
  0x2e   : > { %415 = vmatmul.bf16.vlgmr.msra.gmra.mxu0 %v318_v48  ;;  %459 = vmatmul.bf16.vlgmr.msra.gmra.mxu2 %v319_v49 }
  0x2f   : > { %497 = vmatpush.bf16.msrb.mxu0 %v1000_v3  ;;  %543 = vmatpush.bf16.msrb.mxu2 %v1000_v3 }
  0x30   : > { %510 = vmatpush.bf16.msrb.mxu1 %v1011_v7  ;;  %556 = vmatpush.bf16.msrb.mxu3 %v1011_v7 }
  0x31   : > { %428 = vmatmul.bf16.vlgmr.msra.gmra.mxu1 %v318_v48  ;;  %472 = vmatmul.bf16.vlgmr.msra.gmra.mxu3 %v319_v49 }
  0x33   : > { %498 = vmatpush.bf16.msrb.mxu0 %v1021_v10  ;;  %544 = vmatpush.bf16.msrb.mxu2 %v1021_v10 }
  0x34   : > { %511 = vmatpush.bf16.msrb.mxu1 %v1025_v11  ;;  %557 = vmatpush.bf16.msrb.mxu3 %v1025_v11 }
  0x37   : > { %499 = vmatpush.bf16.msrb.mxu0 %v1041_v16  ;;  %545 = vmatpush.bf16.msrb.mxu2 %v1041_v16 }
  0x38   : > { %512 = vmatpush.bf16.msrb.mxu1 %v1045_v17  ;;  %558 = vmatpush.bf16.msrb.mxu3 %v1045_v17 }
  0x3b   : > { %500 = vmatpush.bf16.msrb.mxu0 %v1061_v22  ;;  %546 = vmatpush.bf16.msrb.mxu2 %v1061_v22 }
  0x3c   : > { %513 = vmatpush.bf16.msrb.mxu1 %v1065_v23  ;;  %559 = vmatpush.bf16.msrb.mxu3 %v1065_v23 }
  0x3f   : > { %501 = vmatpush.bf16.msrb.mxu0 %v1081_v28  ;;  %547 = vmatpush.bf16.msrb.mxu2 %v1081_v28 }
  0x40   : > { %514 = vmatpush.bf16.msrb.mxu1 %v1085_v29  ;;  %560 = vmatpush.bf16.msrb.mxu3 %v1085_v29 }
  0x43   : > { %502 = vmatpush.bf16.msrb.mxu0 %v811_v34  ;;  %548 = vmatpush.bf16.msrb.mxu2 %v811_v34 }
  0x44   : > { %515 = vmatpush.bf16.msrb.mxu1 %v815_v35  ;;  %561 = vmatpush.bf16.msrb.mxu3 %v815_v35 }
  0x47   : > { %503 = vmatpush.bf16.msrb.mxu0 %v803_v40  ;;  %549 = vmatpush.bf16.msrb.mxu2 %v803_v40 }
  0x48   : > { %516 = vmatpush.bf16.msrb.mxu1 %v807_v41  ;;  %562 = vmatpush.bf16.msrb.mxu3 %v807_v41 }
  0x4b   : > { %504 = vmatpush.bf16.msrb.mxu0 %v795_v46  ;;  %550 = vmatpush.bf16.msrb.mxu2 %v795_v46 }
  0x4c   : > { %517 = vmatpush.bf16.msrb.mxu1 %v799_v47  ;;  %563 = vmatpush.bf16.msrb.mxu3 %v799_v47 }
  0x4e   : > { %505 = vmatmul.bf16.vlgmr.msrb.gmra.mxu0 %v320_v50  ;;  %551 = vmatmul.bf16.vlgmr.msrb.gmra.mxu2 %v321_v51 }
  0x4f   : > { %518 = vmatmul.bf16.vlgmr.msrb.gmra.mxu1 %v320_v50  ;;  %564 = vmatmul.bf16.vlgmr.msrb.gmra.mxu3 %v321_v51 }
  0xab   : > { %v416_v52 = vpop.f32.mrf.mxu0 }
  0xac   : > { %v1168_v63 = vadd.f32 %v416_v52, %v323_v59 }
  0xae   : > { %v429_v53 = vpop.f32.mrf.mxu1  ;;  %v433_v5 = vmul.f32 %v1168_v63, %v1168_v63 }
  0xaf   : > { %v1170_v2 = vadd.f32 %v429_v53, %v324_v60 }
  0xb0   : > { %v435_v9 = vmul.f32 %v433_v5, %v1168_v63 }
  0xb1   : > { %v460_v54 = vpop.f32.mrf.mxu2  ;;  %v434_v6 = vmul.f32 %v1170_v2, %v1170_v2 }
  0xb2   : > { %v1164_v61 = vadd.f32 %v460_v54, %v323_v59  ;;  %v437_v13 = vmul.f32 0.044715, %v435_v9 }
  0xb3   : > { %v418_v57 = vpop.f32.mrf.mxu0  ;;  %v436_v10 = vmul.f32 %v434_v6, %v1170_v2 }
  0xb4   : > { %v473_v55 = vpop.f32.mrf.mxu3  ;;  %v477_v3 = vmul.f32 %v1164_v61, %v1164_v61  ;;  %v439_v21 = vadd.f32 %v437_v13, %v1168_v63 }
  0xb5   : > { %v1166_v62 = vadd.f32 %v473_v55, %v324_v60  ;;  %v438_v14 = vmul.f32 0.044715, %v436_v10 }
  0xb6   : > { %v431_v58 = vpop.f32.mrf.mxu1  ;;  %v479_v7 = vmul.f32 %v477_v3, %v1164_v61  ;;  %v441_v29 = vmul.f32 0.7978846, %v439_v21 }
  0xb7   : > { %v478_v4 = vmul.f32 %v1166_v62, %v1166_v62  ;;  %v440_v22 = vadd.f32 %v438_v14, %v1170_v2 }
  0xb8   : > { %v481_v11 = vmul.f32 0.044715, %v479_v7 }
  0xb9   : > { %v462_v0 = vpop.f32.mrf.mxu2  ;;  %v480_v8 = vmul.f32 %v478_v4, %v1166_v62  ;;  %v442_v30 = vmul.f32 0.7978846, %v440_v22 }
  0xba   : > { %v483_v15 = vadd.f32 %v481_v11, %v1164_v61 }
  0xbb   : > { %v482_v12 = vmul.f32 0.044715, %v480_v8 }
  0xbc   : > { %v475_v1 = vpop.f32.mrf.mxu3  ;;  %v485_v25 = vmul.f32 0.7978846, %v483_v15 }
  0xbd   : > { %v484_v18 = vadd.f32 %v482_v12, %v1166_v62 }
  0xbe   : > { %901 = vtanh.f32 %v485_v25 }
  0xbf   : > { %v486_v26 = vmul.f32 0.7978846, %v484_v18 }
  0xc1   : > { %903 = vtanh.f32 %v486_v26 }
  0xc2   : > { %905 = vtanh.f32 %v441_v29 }
  0xc3   : > { %907 = vtanh.f32 %v442_v30 }
  0xc4   : > { %v902_v47 = vpop.eup %901 }
  0xc5   : > { %v489_v57 = vadd.f32 1.0, %v902_v47 }
  0xc7   : > { %v904_v50 = vpop.eup %903  ;;  %v491_v6 = vmul.f32 0.5, %v489_v57 }
  0xc8   : > { %v906_v53 = vpop.eup %905  ;;  %v490_v58 = vadd.f32 1.0, %v904_v50 }
  0xc9   : > { %v908_v56 = vpop.eup %907  ;;  %v445_v1 = vadd.f32 1.0, %v906_v53  ;;  %v493_v13 = vmul.f32 %v491_v6, %v1164_v61 }
  0xca   : > { %v446_v4 = vadd.f32 1.0, %v908_v56  ;;  %v492_v8 = vmul.f32 0.5, %v490_v58 }
  0xcb   : > { %v506_v16 = vpop.f32.mrf.mxu0  ;;  %v447_v9 = vmul.f32 0.5, %v445_v1 }
  0xcc   : > { %v519_v17 = vpop.f32.mrf.mxu1  ;;  %v1186_v19 = vadd.f32 %v506_v16, %v323_v59  ;;  %v448_v11 = vmul.f32 0.5, %v446_v4  ;;  %v494_v15 = vmul.f32 %v492_v8, %v1166_v62 }
  0xcd   : > { %v1188_v20 = vadd.f32 %v519_v17, %v324_v60  ;;  %v449_v17 = vmul.f32 %v447_v9, %v1168_v63 }
  0xce   : > { %v523_v23 = vmul.f32 %v1186_v19, %v1186_v19  ;;  %v450_v22 = vmul.f32 %v448_v11, %v1170_v2 }
  0xcf   : > { %v524_v24 = vmul.f32 %v1188_v20, %v1188_v20  ;;  %v495_v61 = vadd.f32 %v493_v13, %v449_v17 }
  0xd0   : > { %v525_v27 = vmul.f32 %v523_v23, %v1186_v19 }
  0xd1   : > { %v526_v28 = vmul.f32 %v524_v24, %v1188_v20  ;;  %v552_v33 = vpop.f32.mrf.mxu2  ;;  %v589_v24 = vld [vmem:[%s282_s7] sm:$0x3] }
  0xd2   : > { %v527_v31 = vmul.f32 0.044715, %v525_v27  ;;  %v565_v34 = vpop.f32.mrf.mxu3  ;;  %v1198_v35 = vadd.f32 %v552_v33, %v323_v59  ;;  %v496_v27 = vadd.f32 %v494_v15, %v450_v22  ;;  %v591_v30 = vperm.slane %v589_v24, 0 }
  0xd3   : > { %v528_v32 = vmul.f32 0.044715, %v526_v28  ;;  %v1200_v36 = vadd.f32 %v565_v34, %v324_v60  ;;  %v508_v37 = vpop.f32.mrf.mxu0 }
  0xd4   : > { %v521_v38 = vpop.f32.mrf.mxu1  ;;  %v529_v39 = vadd.f32 %v527_v31, %v1186_v19  ;;  %v569_v41 = vmul.f32 %v1198_v35, %v1198_v35 }
  0xd5   : > { %v530_v40 = vadd.f32 %v528_v32, %v1188_v20  ;;  %v570_v42 = vmul.f32 %v1200_v36, %v1200_v36 }
  0xd6   : > { %v531_v43 = vmul.f32 0.7978846, %v529_v39  ;;  %v571_v45 = vmul.f32 %v569_v41, %v1198_v35 }
  0xd7   : > { %v532_v44 = vmul.f32 0.7978846, %v530_v40  ;;  %v572_v46 = vmul.f32 %v570_v42, %v1200_v36 }
  0xd8   : > { %909 = vtanh.f32 %v531_v43  ;;  %v573_v48 = vmul.f32 0.044715, %v571_v45 }
  0xd9   : > { %911 = vtanh.f32 %v532_v44  ;;  %v574_v49 = vmul.f32 0.044715, %v572_v46  ;;  %v554_v51 = vpop.f32.mrf.mxu2 }
  0xda   : > { %v567_v52 = vpop.f32.mrf.mxu3  ;;  %v575_v54 = vadd.f32 %v573_v48, %v1198_v35 }
  0xdb   : > { %v576_v55 = vadd.f32 %v574_v49, %v1200_v36 }
  0xdc   : > { %v577_v59 = vmul.f32 0.7978846, %v575_v54 }
  0xdd   : > { %v578_v60 = vmul.f32 0.7978846, %v576_v55 }
  0xde   : > { %v910_v0 = vpop.eup %909  ;;  %913 = vtanh.f32 %v577_v59 }
  0xdf   : > { %v912_v3 = vpop.eup %911  ;;  %v535_v5 = vadd.f32 1.0, %v910_v0  ;;  %915 = vtanh.f32 %v578_v60 }
  0xe0   : > { %v536_v7 = vadd.f32 1.0, %v912_v3 }
  0xe1   : > { %v537_v10 = vmul.f32 0.5, %v535_v5 }
  0xe2   : > { %v538_v12 = vmul.f32 0.5, %v536_v7 }
  0xe3   : > { %v539_v18 = vmul.f32 %v537_v10, %v1186_v19  ;;  %v592_v19 = vperm.slane %v589_v24, 1 }
  0xe4   : > { %v914_v14 = vpop.eup %913  ;;  %v540_v23 = vmul.f32 %v538_v12, %v1188_v20 }
  0xe5   : > { %v916_v16 = vpop.eup %915  ;;  %v581_v21 = vadd.f32 1.0, %v914_v14  ;;  %v541_v29 = vadd.f32 %v539_v18, %v495_v61 }
  0xe6   : > { %v582_v25 = vadd.f32 1.0, %v916_v16  ;;  %v542_v31 = vadd.f32 %v540_v23, %v496_v27 }
  0xe7   : > { %v583_v26 = vmul.f32 0.5, %v581_v21 }
  0xe8   : > { %v584_v28 = vmul.f32 0.5, %v582_v25 }
  0xe9   : > { %v585_v62 = vmul.f32 %v583_v26, %v1198_v35 }
  0xea   : > { %v586_v63 = vmul.f32 %v584_v28, %v1200_v36 }
  0xeb   : > { %v587_v32 = vadd.f32 %v585_v62, %v541_v29 }
  0xec   : > { %v588_v2 = vadd.f32 %v586_v63, %v542_v31 }
  0xed   : > { %v595_v33 = vmul.f32 %v591_v30, %v587_v32 }
  0xee   : > { %v596_v20 = vmul.f32 %v592_v19, %v588_v2 }
  0xef   : > { %v607_v34 = vsel %vm606_vm0, %v595_v33, 0.0 }
  0xf0   : > { %v608_v37 = vrot.slane %v607_v34, 4  ;;  %v597_v38 = vpack.c.bf16 %v596_v20, %v595_v33  ;;  %v614_v39 = vsel %vm606_vm0, %v596_v20, 0.0 }
  0xf1   : > { %v615_v40 = vrot.slane %v614_v39, 4 }
  0xf2   : > { %v609_v41 = vadd.f32 %v608_v37, %v607_v34  ;;  %v599_v35 = vrot.slane %v597_v38, 2 }
  0xf3   : > { %v616_v36 = vadd.f32 %v615_v40, %v614_v39 }
  0xf4   : > { %v610_v42 = vrot.slane %v609_v41, 2  ;;  %v603_v43 = vsel %vm600_vm1, %v597_v38, %v599_v35 }
  0xf5   : > { %605 = vst [vmem:[%s291_s11] sm:$0xf] %v603_v43  ;;  %v617_v44 = vrot.slane %v616_v36, 2 }
  0xf6   : > { %v611_v45 = vadd.f32 %v610_v42, %v609_v41 }
  0xf7   : > { %v618_v46 = vadd.f32 %v617_v44, %v616_v36 }
  0xf8   : > { %v612_v47 = vrot.slane %v611_v45, 1 }
  0xf9   : > { %v619_v48 = vrot.slane %v618_v46, 1 }
  0xfa   : > { %v613_v49 = vadd.f32 %v612_v47, %v611_v45 }
  0xfb   : > { %v620_v50 = vadd.f32 %v619_v48, %v618_v46 }
  0xfc   : > { %621 = vst [vmem:[%s300_s15] sm:$0xff] %v613_v49 }
  0xfd   : > { %622 = vst [vmem:[%s300_s15 + $0x8] sm:$0xff] %v620_v50 }
  0xfe PF: > { %s16_s20 = sadd.s32 1, %s939_s20   ;;  %s1247_s18 = smov %s935_s19 }
  0xff   : > { %p13_p5 = scmp.ge.s32.totalorder %s16_s20, 4   ;;  %s1248_s19 = smov %s1250_s21 }
 0x101   :  { %15 = sbr.rel (!%p13_p5) target bundleno = 2 (0x2), region = 81 }

// kernel: terminator_forward.5
= control target key start
LH: loop header
LB: loop body
LE: loop exit
PB: predicated region body
PF: predicated region fallthrough
CT: control target
= control target key end

     0   :  { %11 = vsyncpa [#allocation3], 0  ;;  %s3100_s0 = inlined_call_operand.vmem [shape: bf16[2,1,1024], index: 0, kind: input, shape index: {}]   ;;  %s3101_s1 = inlined_call_operand.vmem [shape: f32[2,1,512], index: 1, kind: input, shape index: {}]   ;;  %s3102_s2 = inlined_call_operand.vmem [shape: bf16[256,512], index: 2, kind: input, shape index: {}]   ;;  %s3103_s3 = inlined_call_operand.vmem [shape: f32[1,512], index: 3, kind: input, shape index: {}]   ;;  %s3104_s4 = inlined_call_operand.hbm [shape: bf16[2,1,512], index: 4, kind: output, shape index: {0}]   ;;  %s3105_s5 = inlined_call_operand.vmem [shape: f32[2,1,8,512], index: 5, kind: output, shape index: {1}]  }
   0x1   :  { %13 = vsyncpa [#allocation3 + $0x1], 0  ;;  %s2034_s18 = smov 0   ;;  %s2036_s19 = smov 0  }
   0x2   :  { %s2038_s20 = smov 0   ;;  %s2040_s21 = smov 0  }
   0x3   :  { %s2042_s22 = smov 0   ;;  %s2044_s23 = smov 0  }
   0x4 LB: > { %s1502_s24 = sadd.s32 4294967295, %s2002_s23   ;;  %s1503_s25 = sadd.s32 4294967294, %s2002_s23   ;;  %s2002_s23 = sphi %s2044_s23, %s19_s23   ;;  %s1998_s22 = sphi %s2042_s22, %s3204_s22   ;;  %s1994_s21 = sphi %s2040_s21, %s3203_s21   ;;  %s1990_s20 = sphi %s2038_s20, %s3202_s20   ;;  %s1986_s19 = sphi %s2036_s19, %s3201_s19   ;;  %s1982_s18 = sphi %s2034_s18, %s3200_s18  }
   0x5   : > { %s31_s26 = sadd.s32 1, %s1998_s22  ;;  %s136_s27 = sadd.s32 1, %s1990_s20 }
   0x6   : > { %p33_p0 = scmp.ge.s32.totalorder %s31_s26, 2  ;;  %p146_p1 = scmp.ne.s32.totalorder %s1990_s20, %s1986_s19 }
   0x7   : > { %p147_p2 = scmp.eq.s32.totalorder %s1502_s24, 1  ;;  %p152_p3 = scmp.ne.s32.totalorder %s1986_s19, %s1982_s18 }
   0x8   : > { %s3206_s26 = smov (%p33_p0, %s31_s26), 0  ;;  %p153_p5 = scmp.eq.s32.totalorder %s1503_s25, 1 }
   0x9   : > { %p2074_p4 = por %p147_p2, %p146_p1  ;;  %s131_s29 = ssub.s32 %s1998_s22, %s3206_s26 }
   0xa   : > { %p1506_p6 = scmp.ge.s32.totalorder %s2002_s23, 1  ;;  %p134_p7 = scmp.eq.s32.totalorder %s131_s29, 0 }
   0xb   : > { %p2081_p8 = por %p153_p5, %p152_p3  ;;  %p223_p9 = scmp.lt.s32.totalorder %s2002_s23, 3 }
   0xc   : > { %s2087_s6 = scalar_select %p134_p7, %s1990_s20, %s136_s27  }
   0xd   : > { %p224_p10 = pnand %p1506_p6, %p223_p9 }
   0xf   : > { %227 = sbr.rel (%p224_p10) target bundleno = 452 (0x1c4), region = 36 }
  0x14   : > { %v1626_v0 = vld [vmem:[%s3102_s2 + $0xe0] sm:$0xf]  ;;  %v1803_v1 = vld [vmem:[%s3102_s2 + $0xec] sm:$0xf0]  ;;  %v1801_v5 = vld [vmem:[%s3102_s2 + $0xe4] sm:$0xf] }
  0x15   : > { %v1754_v2 = vld [vmem:[%s3102_s2 + $0x1e0] sm:$0xf]  ;;  %v2098_v3 = vor.u32 %v1803_v1, %v1626_v0  ;;  %v1835_v4 = vld [vmem:[%s3102_s2 + $0x1ec] sm:$0xf0]  ;;  %v1628_v6 = vld [vmem:[%s3102_s2 + $0xf0] sm:$0xf0] }
  0x16   : > { %v2109_v7 = vor.u32 %v1835_v4, %v1754_v2  ;;  %v2111_v8 = vor.u32 %v1801_v5, %v1628_v6  ;;  %v1833_v9 = vld [vmem:[%s3102_s2 + $0x1e4] sm:$0xf]  ;;  %v1756_v10 = vld [vmem:[%s3102_s2 + $0x1f0] sm:$0xf0]  ;;  %v1610_v11 = vld [vmem:[%s3102_s2 + $0xc0] sm:$0xf] }
  0x17   : > { %692 = vmatpush.bf16.msra.mxu0 %v2098_v3  ;;  %v2123_v12 = vor.u32 %v1833_v9, %v1756_v10  ;;  %v1799_v13 = vld [vmem:[%s3102_s2 + $0xcc] sm:$0xf0]  ;;  %v1738_v14 = vld [vmem:[%s3102_s2 + $0x1c0] sm:$0xf]  ;;  %v1797_v18 = vld [vmem:[%s3102_s2 + $0xc4] sm:$0xf] }
  0x18   : > { %v1831_v15 = vld [vmem:[%s3102_s2 + $0x1cc] sm:$0xf0]  ;;  %705 = vmatpush.bf16.msra.mxu1 %v2109_v7  ;;  %718 = vmatpush.bf16.msra.mxu2 %v2111_v8  ;;  %v2136_v16 = vor.u32 %v1799_v13, %v1610_v11  ;;  %v1612_v19 = vld [vmem:[%s3102_s2 + $0xd0] sm:$0xf0]  ;;  %v1829_v20 = vld [vmem:[%s3102_s2 + $0x1c4] sm:$0xf] }
  0x19   : > { %v2138_v17 = vor.u32 %v1831_v15, %v1738_v14  ;;  %731 = vmatpush.bf16.msra.mxu3 %v2123_v12  ;;  %v2150_v21 = vor.u32 %v1797_v18, %v1612_v19  ;;  %v1740_v22 = vld [vmem:[%s3102_s2 + $0x1d0] sm:$0xf0]  ;;  %v1594_v23 = vld [vmem:[%s3102_s2 + $0xa0] sm:$0xf]  ;;  %v1795_v24 = vld [vmem:[%s3102_s2 + $0xac] sm:$0xf0] }
  0x1a   : > { %v2161_v25 = vor.u32 %v1829_v20, %v1740_v22  ;;  %v1722_v26 = vld [vmem:[%s3102_s2 + $0x1a0] sm:$0xf]  ;;  %v1827_v27 = vld [vmem:[%s3102_s2 + $0x1ac] sm:$0xf0]  ;;  %v1793_v28 = vld [vmem:[%s3102_s2 + $0xa4] sm:$0xf]  ;;  %v2173_v29 = vor.u32 %v1795_v24, %v1594_v23 }
  0x1b   : > { %693 = vmatpush.bf16.msra.mxu0 %v2136_v16  ;;  %v1596_v30 = vld [vmem:[%s3102_s2 + $0xb0] sm:$0xf0]  ;;  %v1825_v31 = vld [vmem:[%s3102_s2 + $0x1a4] sm:$0xf]  ;;  %v2186_v33 = vor.u32 %v1827_v27, %v1722_v26  ;;  %v1578_v35 = vld [vmem:[%s3102_s2 + $0x80] sm:$0xf] }
  0x1c   : > { %v1724_v32 = vld [vmem:[%s3102_s2 + $0x1b0] sm:$0xf0]  ;;  %706 = vmatpush.bf16.msra.mxu1 %v2138_v17  ;;  %719 = vmatpush.bf16.msra.mxu2 %v2150_v21  ;;  %v2188_v34 = vor.u32 %v1793_v28, %v1596_v30  ;;  %v1791_v36 = vld [vmem:[%s3102_s2 + $0x8c] sm:$0xf0]  ;;  %v1706_v37 = vld [vmem:[%s3102_s2 + $0x180] sm:$0xf] }
  0x1d   : > { %732 = vmatpush.bf16.msra.mxu3 %v2161_v25  ;;  %v2200_v38 = vor.u32 %v1825_v31, %v1724_v32  ;;  %v1823_v39 = vld [vmem:[%s3102_s2 + $0x18c] sm:$0xf0]  ;;  %v1789_v40 = vld [vmem:[%s3102_s2 + $0x84] sm:$0xf]  ;;  %v1580_v41 = vld [vmem:[%s3102_s2 + $0x90] sm:$0xf0]  ;;  %v2218_v44 = vor.u32 %v1791_v36, %v1578_v35 }
  0x1e   : > { %v1821_v42 = vld [vmem:[%s3102_s2 + $0x184] sm:$0xf]  ;;  %v1708_v43 = vld [vmem:[%s3102_s2 + $0x190] sm:$0xf0]  ;;  %v2222_v45 = vor.u32 %v1823_v39, %v1706_v37  ;;  %v2224_v46 = vor.u32 %v1789_v40, %v1580_v41  ;;  %v1562_v47 = vld [vmem:[%s3102_s2 + $0x60] sm:$0xf] }
  0x1f   : > { %694 = vmatpush.bf16.msra.mxu0 %v2173_v29  ;;  %v1787_v48 = vld [vmem:[%s3102_s2 + $0x6c] sm:$0xf0]  ;;  %v1690_v49 = vld [vmem:[%s3102_s2 + $0x160] sm:$0xf]  ;;  %v2236_v50 = vor.u32 %v1821_v42, %v1708_v43  ;;  %v1785_v52 = vld [vmem:[%s3102_s2 + $0x64] sm:$0xf] }
  0x20   : > { %707 = vmatpush.bf16.msra.mxu1 %v2186_v33  ;;  %720 = vmatpush.bf16.msra.mxu2 %v2188_v34  ;;  %v1819_v51 = vld [vmem:[%s3102_s2 + $0x16c] sm:$0xf0]  ;;  %v1564_v53 = vld [vmem:[%s3102_s2 + $0x70] sm:$0xf0]  ;;  %v1817_v54 = vld [vmem:[%s3102_s2 + $0x164] sm:$0xf]  ;;  %v2254_v56 = vor.u32 %v1787_v48, %v1562_v47 }
  0x21   : > { %733 = vmatpush.bf16.msra.mxu3 %v2200_v38  ;;  %v1692_v55 = vld [vmem:[%s3102_s2 + $0x170] sm:$0xf0]  ;;  %v2258_v57 = vor.u32 %v1819_v51, %v1690_v49  ;;  %v2260_v58 = vor.u32 %v1785_v52, %v1564_v53  ;;  %v1546_v59 = vld [vmem:[%s3102_s2 + $0x40] sm:$0xf]  ;;  %v1783_v60 = vld [vmem:[%s3102_s2 + $0x4c] sm:$0xf0] }
  0x22   : > { %v1674_v61 = vld [vmem:[%s3102_s2 + $0x140] sm:$0xf]  ;;  %v2272_v62 = vor.u32 %v1817_v54, %v1692_v55  ;;  %v1815_v63 = vld [vmem:[%s3102_s2 + $0x14c] sm:$0xf0]  ;;  %v1781_v0 = vld [vmem:[%s3102_s2 + $0x44] sm:$0xf]  ;;  %v2290_v5 = vor.u32 %v1783_v60, %v1546_v59 }
  0x23   : > { %695 = vmatpush.bf16.msra.mxu0 %v2218_v44  ;;  %v1548_v1 = vld [vmem:[%s3102_s2 + $0x50] sm:$0xf0]  ;;  %v1813_v2 = vld [vmem:[%s3102_s2 + $0x144] sm:$0xf]  ;;  %v2294_v6 = vor.u32 %v1815_v63, %v1674_v61  ;;  %v1530_v10 = vld [vmem:[%s3102_s2 + $0x20] sm:$0xf] }
  0x24   : > { %708 = vmatpush.bf16.msra.mxu1 %v2222_v45  ;;  %721 = vmatpush.bf16.msra.mxu2 %v2224_v46  ;;  %v1676_v4 = vld [vmem:[%s3102_s2 + $0x150] sm:$0xf0]  ;;  %v2296_v9 = vor.u32 %v1781_v0, %v1548_v1  ;;  %v1779_v11 = vld [vmem:[%s3102_s2 + $0x2c] sm:$0xf0]  ;;  %v1658_v13 = vld [vmem:[%s3102_s2 + $0x120] sm:$0xf] }
  0x25   : > { %734 = vmatpush.bf16.msra.mxu3 %v2236_v50  ;;  %v2308_v14 = vor.u32 %v1813_v2, %v1676_v4  ;;  %v1811_v15 = vld [vmem:[%s3102_s2 + $0x12c] sm:$0xf0]  ;;  %v1777_v18 = vld [vmem:[%s3102_s2 + $0x24] sm:$0xf]  ;;  %v1532_v19 = vld [vmem:[%s3102_s2 + $0x30] sm:$0xf0]  ;;  %v2326_v23 = vor.u32 %v1779_v11, %v1530_v10 }
  0x26   : > { %v1809_v20 = vld [vmem:[%s3102_s2 + $0x124] sm:$0xf]  ;;  %v1660_v22 = vld [vmem:[%s3102_s2 + $0x130] sm:$0xf0]  ;;  %v1514_v24 = vld [vmem:[%s3102_s2] sm:$0xf]  ;;  %v2339_v28 = vor.u32 %v1811_v15, %v1658_v13  ;;  %v2341_v30 = vor.u32 %v1777_v18, %v1532_v19 }
  0x27   : > { %696 = vmatpush.bf16.msra.mxu0 %v2254_v56  ;;  %v1775_v26 = vld [vmem:[%s3102_s2 + $0xc] sm:$0xf0]  ;;  %v1642_v27 = vld [vmem:[%s3102_s2 + $0x100] sm:$0xf]  ;;  %v1773_v32 = vld [vmem:[%s3102_s2 + $0x4] sm:$0xf]  ;;  %v2353_v36 = vor.u32 %v1809_v20, %v1660_v22 }
  0x28   : > { %709 = vmatpush.bf16.msra.mxu1 %v2258_v57  ;;  %722 = vmatpush.bf16.msra.mxu2 %v2260_v58  ;;  %v1807_v31 = vld [vmem:[%s3102_s2 + $0x10c] sm:$0xf0]  ;;  %v1516_v35 = vld [vmem:[%s3102_s2 + $0x10] sm:$0xf0]  ;;  %v1805_v37 = vld [vmem:[%s3102_s2 + $0x104] sm:$0xf]  ;;  %v2372_v43 = vor.u32 %v1775_v26, %v1514_v24 }
  0x29   : > { %735 = vmatpush.bf16.msra.mxu3 %v2272_v62  ;;  %v1644_v39 = vld [vmem:[%s3102_s2 + $0x110] sm:$0xf0]  ;;  %v1634_v40 = vld [vmem:[%s3102_s2 + $0xe8] sm:$0xf]  ;;  %v1804_v41 = vld [vmem:[%s3102_s2 + $0xf4] sm:$0xf0]  ;;  %v2385_v51 = vor.u32 %v1807_v31, %v1642_v27  ;;  %v2387_v52 = vor.u32 %v1773_v32, %v1516_v35 }
  0x2a   : > { %v1762_v42 = vld [vmem:[%s3102_s2 + $0x1e8] sm:$0xf]  ;;  %p267_p11 = scmp.lt.s32.totalorder %s1994_s21, 1  ;;  %v1836_v47 = vld [vmem:[%s3102_s2 + $0x1f4] sm:$0xf0]  ;;  %v2399_v55 = vor.u32 %v1805_v37, %v1644_v39  ;;  %v2401_v59 = vor.u32 %v1804_v41, %v1634_v40  ;;  %vm1317_vm1 = vcmask 1041409  }
  0x2b   : > { %697 = vmatpush.bf16.msra.mxu0 %v2290_v5  ;;  %v1802_v48 = vld [vmem:[%s3102_s2 + $0xec] sm:$0xf]  ;;  %v1636_v49 = vld [vmem:[%s3102_s2 + $0xf8] sm:$0xf0]  ;;  %v1618_v60 = vld [vmem:[%s3102_s2 + $0xc8] sm:$0xf]  ;;  %v2406_v61 = vor.u32 %v1836_v47, %v1762_v42 }
  0x2c   : > { %710 = vmatpush.bf16.msra.mxu1 %v2294_v6  ;;  %723 = vmatpush.bf16.msra.mxu2 %v2296_v9  ;;  %v1834_v53 = vld [vmem:[%s3102_s2 + $0x1ec] sm:$0xf]  ;;  %v1764_v54 = vld [vmem:[%s3102_s2 + $0x1f8] sm:$0xf0]  ;;  %s2396_s16 = scalar_select %p267_p11, %s1994_s21, 1  ;;  %v2408_v63 = vor.u32 %v1802_v48, %v1636_v49  ;;  %vm1303_vm3 = vcmask 1040384  }
  0x2d   : > { %736 = vmatpush.bf16.msra.mxu3 %v2308_v14  ;;  %v1800_v0 = vld [vmem:[%s3102_s2 + $0xd4] sm:$0xf0]  ;;  %v1746_v1 = vld [vmem:[%s3102_s2 + $0x1c8] sm:$0xf]  ;;  %v2418_v2 = vor.u32 %v1834_v53, %v1764_v54  ;;  %v1798_v10 = vld [vmem:[%s3102_s2 + $0xcc] sm:$0xf] }
  0x2e   : > { %s1508_s8 = sshll.u32 %s2396_s16, 3  ;;  %v1832_v4 = vld [vmem:[%s3102_s2 + $0x1d4] sm:$0xf0]  ;;  %v1620_v11 = vld [vmem:[%s3102_s2 + $0xd8] sm:$0xf0]  ;;  %v2445_v19 = vor.u32 %v1800_v0, %v1618_v60  ;;  %s1509_s14 = sshll.u32 %s2396_s16, 2 }
  0x2f   : > { %698 = vmatpush.bf16.msra.mxu0 %v2326_v23  ;;  %s2432_s24 = scalar_lea.vmem %s3100_s0, %s1508_s8  ;;  %v1830_v13 = vld [vmem:[%s3102_s2 + $0x1cc] sm:$0xf]  ;;  %v1748_v15 = vld [vmem:[%s3102_s2 + $0x1d8] sm:$0xf0]  ;;  %v2449_v20 = vor.u32 %v1832_v4, %v1746_v1  ;;  %v2451_v22 = vor.u32 %v1798_v10, %v1620_v11  ;;  %v1602_v24 = vld [vmem:[%s3102_s2 + $0xa8] sm:$0xf]  ;;  %s278_s25 = scalar_lea.vmem %s3101_s1, %s1509_s14 }
  0x30   : > { %711 = vmatpush.bf16.msra.mxu1 %v2339_v28  ;;  %724 = vmatpush.bf16.msra.mxu2 %v2341_v30  ;;  %v353_v18 = vld [vmem:[%s2432_s24] sm:$0x3]  ;;  %v1796_v26 = vld [vmem:[%s3102_s2 + $0xb4] sm:$0xf0]  ;;  %v1730_v27 = vld [vmem:[%s3102_s2 + $0x1a8] sm:$0xf]  ;;  %v2463_v31 = vor.u32 %v1830_v13, %v1748_v15 }
  0x31   : > { %737 = vmatpush.bf16.msra.mxu3 %v2353_v36  ;;  %358 = vst [vmem:[#allocation1] ss:$9 sm:$0xff] %v353_v18  ;;  %v1828_v32 = vld [vmem:[%s3102_s2 + $0x1b4] sm:$0xf0]  ;;  %v1794_v35 = vld [vmem:[%s3102_s2 + $0xac] sm:$0xf]  ;;  %v2481_v41 = vor.u32 %v1796_v26, %v1602_v24 }
  0x32   : > { %3146 = vst [vmem:[#allocation5_spill] sm:$0xff] %v2449_v20  ;;  %v1604_v37 = vld [vmem:[%s3102_s2 + $0xb8] sm:$0xf0]  ;;  %v1826_v39 = vld [vmem:[%s3102_s2 + $0x1ac] sm:$0xf]  ;;  %v2491_v48 = vor.u32 %v1828_v32, %v1730_v27  ;;  %s1772_s27 = sshll.u32 %s2396_s16, 5 }
  0x33   : > { %699 = vmatpush.bf16.msra.mxu0 %v2372_v43  ;;  %3147 = vst [vmem:[#allocation6_spill] sm:$0xff] %v2463_v31  ;;  %v1732_v40 = vld [vmem:[%s3102_s2 + $0x1b8] sm:$0xf0]  ;;  %v1586_v42 = vld [vmem:[%s3102_s2 + $0x88] sm:$0xf]  ;;  %v2493_v49 = vor.u32 %v1794_v35, %v1604_v37  ;;  %s3011_s8 = scalar_lea.vmem %s3105_s5, %s1772_s27  ;;  %s253_s16 = sand.u32 1, %s1986_s19  }
  0x34   : > { %712 = vmatpush.bf16.msra.mxu1 %v2385_v51  ;;  %725 = vmatpush.bf16.msra.mxu2 %v2387_v52  ;;  %3148 = vst [vmem:[#allocation7_spill] sm:$0xff] %v2481_v41  ;;  %v1792_v47 = vld [vmem:[%s3102_s2 + $0x94] sm:$0xf0]  ;;  %v354_v53 = vld [vmem:[%s2432_s24 + $0x2] sm:$0x3]  ;;  %v2503_v0 = vor.u32 %v1826_v39, %v1732_v40  ;;  %vm1307_vm6 = vcmask 1042434  }
  0x35   : > { %738 = vmatpush.bf16.msra.mxu3 %v2399_v55  ;;  %3149 = vst [vmem:[#allocation8_spill] sm:$0xff] %v2491_v48  ;;  %v1714_v54 = vld [vmem:[%s3102_s2 + $0x188] sm:$0xf]  ;;  %v1824_v60 = vld [vmem:[%s3102_s2 + $0x194] sm:$0xf0]  ;;  %v2523_v18 = vor.u32 %v1792_v47, %v1586_v42  ;;  %s1507_s9 = sshll.u32 %s253_s16, 2 }
  0x36   : > { %3150 = vst [vmem:[#allocation9_spill] sm:$0xff] %v2493_v49  ;;  %v1790_v1 = vld [vmem:[%s3102_s2 + $0x8c] sm:$0xf]  ;;  %v1588_v4 = vld [vmem:[%s3102_s2 + $0x98] sm:$0xf0]  ;;  %v2527_v24 = vor.u32 %v1824_v60, %v1714_v54  ;;  %s1769_s10 = sshll.u32 %s1994_s21, 2 }
  0x37   : > { %744 = vmatpush.bf16.msrb.mxu0 %v2401_v59  ;;  %v1822_v10 = vld [vmem:[%s3102_s2 + $0x18c] sm:$0xf]  ;;  %v1716_v15 = vld [vmem:[%s3102_s2 + $0x198] sm:$0xf0]  ;;  %3151 = vst [vmem:[#allocation10_spill] sm:$0xff] %v2523_v18  ;;  %v2529_v26 = vor.u32 %v1790_v1, %v1588_v4  ;;  %vm1325_vm10 = vcmask 1043459  }
  0x38   : > { %757 = vmatpush.bf16.msrb.mxu1 %v2406_v61  ;;  %770 = vmatpush.bf16.msrb.mxu2 %v2408_v63  ;;  %v2514_v11 = vld [vmem:[#allocation1] sm:$0xff]  ;;  %v2516_v13 = vld [vmem:[#allocation1 + $0x9] sm:$0xff]  ;;  %3152 = vst [vmem:[#allocation11_spill] sm:$0xff] %v2527_v24  ;;  %v1788_v32 = vld [vmem:[%s3102_s2 + $0x74] sm:$0xf0]  ;;  %v2541_v37 = vor.u32 %v1822_v10, %v1716_v15  ;;  %vm1311_vm14 = vcmask 1041408  }
  0x39   : > { %783 = vmatpush.bf16.msrb.mxu3 %v2418_v2  ;;  %726 = vmatmul.bf16.vlgmr.msra.gmra.mxu2 %v2514_v11  ;;  %833 = vst [vmem:[#allocation1] ss:$9 sm:$0xff] %v354_v53  ;;  %v1570_v27 = vld [vmem:[%s3102_s2 + $0x68] sm:$0xf]  ;;  %v1820_v39 = vld [vmem:[%s3102_s2 + $0x174] sm:$0xf0] }
  0x3a   : > { %3153 = vst [vmem:[#allocation12_spill] sm:$0xff] %v2529_v26  ;;  %v1698_v35 = vld [vmem:[%s3102_s2 + $0x168] sm:$0xf]  ;;  %700 = vmatmul.bf16.vlgmr.msra.gmra.mxu0 %v2514_v11  ;;  %v1786_v40 = vld [vmem:[%s3102_s2 + $0x6c] sm:$0xf]  ;;  %739 = vmatmul.bf16.vlgmr.msra.gmra.mxu3 %v2516_v13  ;;  %v2562_v54 = vor.u32 %v1788_v32, %v1570_v27  ;;  %s255_s21 = scalar_lea.vmem [#allocation2], %s1507_s9 }
  0x3b   : > { %745 = vmatpush.bf16.msrb.mxu0 %v2445_v19  ;;  %3154 = vst [vmem:[#allocation13_spill] sm:$0xff] %v2541_v37  ;;  %v1572_v42 = vld [vmem:[%s3102_s2 + $0x78] sm:$0xf0]  ;;  %713 = vmatmul.bf16.vlgmr.msra.gmra.mxu1 %v2516_v13  ;;  %v1818_v47 = vld [vmem:[%s3102_s2 + $0x16c] sm:$0xf]  ;;  %v2566_v60 = vor.u32 %v1820_v39, %v1698_v35  ;;  %s1368_s13 = sshll.u32 %s255_s21, 4  ;;  %s1369_s13 = int_to_ptr.vmem [resolvable:$true] %s1368_s13 }
  0x3c   : > { %758 = vmatpush.bf16.msrb.mxu1 %v2449_v20  ;;  %771 = vmatpush.bf16.msrb.mxu2 %v2451_v22  ;;  %v1700_v53 = vld [vmem:[%s3102_s2 + $0x178] sm:$0xf0]  ;;  %3155 = vst [vmem:[#allocation14_spill] sm:$0xff] %v2562_v54  ;;  %v2568_v1 = vor.u32 %v1786_v40, %v1572_v42  ;;  %v1554_v4 = vld [vmem:[%s3102_s2 + $0x48] sm:$0xf]  ;;  %s1345_s15 = scalar_lea.sflag [#allocation3], %s253_s16 }
  0x3d   : > { %784 = vmatpush.bf16.msrb.mxu3 %v2463_v31  ;;  %3156 = vst [vmem:[#allocation15_spill] sm:$0xff] %v2566_v60  ;;  %v1784_v10 = vld [vmem:[%s3102_s2 + $0x54] sm:$0xf0]  ;;  %v1682_v15 = vld [vmem:[%s3102_s2 + $0x148] sm:$0xf]  ;;  %v2580_v27 = vor.u32 %v1818_v47, %v1700_v53  ;;  %s1944_s7 = scalar_lea.hbm %s3104_s4, 8 }
  0x3e   : > { %3157 = vst [vmem:[#allocation16_spill] sm:$0xff] %v2568_v1  ;;  %v1816_v32 = vld [vmem:[%s3102_s2 + $0x154] sm:$0xf0]  ;;  %v1782_v35 = vld [vmem:[%s3102_s2 + $0x4c] sm:$0xf]  ;;  %v2598_v47 = vor.u32 %v1784_v10, %v1554_v4 }
  0x3f   : > { %746 = vmatpush.bf16.msrb.mxu0 %v2481_v41  ;;  %3158 = vst [vmem:[#allocation17_spill] sm:$0xff] %v2580_v27  ;;  %v1556_v39 = vld [vmem:[%s3102_s2 + $0x58] sm:$0xf0]  ;;  %v1814_v40 = vld [vmem:[%s3102_s2 + $0x14c] sm:$0xf]  ;;  %v2602_v53 = vor.u32 %v1816_v32, %v1682_v15 }
  0x40   : > { %759 = vmatpush.bf16.msrb.mxu1 %v2491_v48  ;;  %772 = vmatpush.bf16.msrb.mxu2 %v2493_v49  ;;  %v1684_v42 = vld [vmem:[%s3102_s2 + $0x158] sm:$0xf0]  ;;  %v1666_v4 = vld [vmem:[%s3102_s2 + $0x128] sm:$0xf]  ;;  %v1812_v15 = vld [vmem:[%s3102_s2 + $0x134] sm:$0xf0] }
  0x41   : > { %785 = vmatpush.bf16.msrb.mxu3 %v2503_v0  ;;  %3159 = vst [vmem:[#allocation18_spill] sm:$0xff] %v2602_v53  ;;  %v2616_v10 = vor.u32 %v1814_v40, %v1684_v42  ;;  %v1778_v32 = vld [vmem:[%s3102_s2 + $0x2c] sm:$0xf]  ;;  %v1668_v40 = vld [vmem:[%s3102_s2 + $0x138] sm:$0xf0] }
  0x42   : > { %vm1315_vm0 = vsmask.f32 256  ;;  %vm1318_vm2 = vsmask.f32 1280  ;;  %vm1322_vm7 = vsmask.f32 2304 }
  0x43   : > { %747 = vmatpush.bf16.msrb.mxu0 %v2523_v18  ;;  %3161 = vst [vmem:[#allocation20_spill] sm:$0xff] %v2616_v10  ;;  %vm3026_vm4 = vmand %vm1303_vm3, %vm1315_vm0  ;;  %vm1326_vm11 = vsmask.f32 3328 }
  0x44   : > { %760 = vmatpush.bf16.msrb.mxu1 %v2527_v24  ;;  %773 = vmatpush.bf16.msrb.mxu2 %v2529_v26  ;;  %v1538_v26 = vld [vmem:[%s3102_s2 + $0x28] sm:$0xf]  ;;  %v1780_v24 = vld [vmem:[%s3102_s2 + $0x34] sm:$0xf0]  ;;  %vm3030_vm5 = vmand %vm1317_vm1, %vm1318_vm2 }
  0x45   : > { %786 = vmatpush.bf16.msrb.mxu3 %v2541_v37  ;;  %v2604_v37 = vor.u32 %v1782_v35, %v1556_v39  ;;  %v1540_v35 = vld [vmem:[%s3102_s2 + $0x38] sm:$0xf0]  ;;  %v1810_v39 = vld [vmem:[%s3102_s2 + $0x12c] sm:$0xf]  ;;  %v2634_v42 = vor.u32 %v1780_v24, %v1538_v26  ;;  %v1650_v24 = vld [vmem:[%s3102_s2 + $0x108] sm:$0xf] }
  0x46   : > { %v2652_v26 = vor.u32 %v1810_v39, %v1668_v40  ;;  %v1652_v39 = vld [vmem:[%s3102_s2 + $0x118] sm:$0xf0]  ;;  %vm1320_vm8 = vmor %vm3030_vm5, %vm3026_vm4 }
  0x47   : > { %748 = vmatpush.bf16.msrb.mxu0 %v2562_v54  ;;  %3160 = vst [vmem:[#allocation19_spill] sm:$0xff] %v2604_v37  ;;  %v1776_v54 = vld [vmem:[%s3102_s2 + $0x14] sm:$0xf0]  ;;  %vm1323_vm9 = vmand %vm1307_vm6, %vm1322_vm7 }
  0x48   : > { %761 = vmatpush.bf16.msrb.mxu1 %v2566_v60  ;;  %774 = vmatpush.bf16.msrb.mxu2 %v2568_v1  ;;  %3162 = vst [vmem:[#allocation21_spill] sm:$0xff] %v2634_v42  ;;  %v2640_v1 = vor.u32 %v1778_v32, %v1540_v35  ;;  %v1522_v60 = vld [vmem:[%s3102_s2 + $0x8] sm:$0xf]  ;;  %v1524_v32 = vld [vmem:[%s3102_s2 + $0x18] sm:$0xf0]  ;;  %vm3046_vm12 = vmor %vm1323_vm9, %vm1320_vm8 }
  0x49   : > { %787 = vmatpush.bf16.msrb.mxu3 %v2580_v27  ;;  %v2638_v27 = vor.u32 %v1812_v15, %v1666_v4  ;;  %v1808_v4 = vld [vmem:[%s3102_s2 + $0x114] sm:$0xf0]  ;;  %v1774_v15 = vld [vmem:[%s3102_s2 + $0xc] sm:$0xf]  ;;  %v2670_v40 = vor.u32 %v1776_v54, %v1522_v60  ;;  %v2688_v54 = vld [vmem:[#allocation1] sm:$0xff] }
  0x4a   : > { %3164 = vst [vmem:[#allocation23_spill] sm:$0xff] %v2640_v1  ;;  %v1806_v35 = vld [vmem:[%s3102_s2 + $0x10c] sm:$0xf]  ;;  %v355_v60 = vld [vmem:[%s2432_s24 + $0x4] sm:$0x3]  ;;  %vm3054_vm13 = vmand %vm1325_vm10, %vm1326_vm11 }
  0x4b   : > { %749 = vmatpush.bf16.msrb.mxu0 %v2598_v47  ;;  %3163 = vst [vmem:[#allocation22_spill] sm:$0xff] %v2638_v27  ;;  %vm1328_vm15 = vmor %vm3054_vm13, %vm3046_vm12 }
  0x4c   : > { %762 = vmatpush.bf16.msrb.mxu1 %v2602_v53  ;;  %775 = vmatpush.bf16.msrb.mxu2 %v2604_v37  ;;  %v2676_v37 = vor.u32 %v1774_v15, %v1524_v32  ;;  %v2679_v53 = vor.u32 %v1806_v35, %v1652_v39  ;;  %v3168_v15 = vld [vmem:[#allocation14_spill] sm:$0xff]  ;;  %v3169_v32 = vld [vmem:[#allocation15_spill] sm:$0xff]  ;;  %v3170_v35 = vld [vmem:[#allocation16_spill] sm:$0xff] }
  0x4d   : > { %788 = vmatpush.bf16.msrb.mxu3 %v2616_v10  ;;  %v2674_v10 = vor.u32 %v1808_v4, %v1650_v24  ;;  %v2691_v24 = vld [vmem:[#allocation1 + $0x9] sm:$0xff] }
  0x4e   : > { %983 = vst [vmem:[#allocation1] ss:$9 sm:$0xff] %v355_v60  ;;  %v3167_v4 = vld [vmem:[#allocation13_spill] sm:$0xff]  ;;  %v3172_v60 = vld [vmem:[#allocation18_spill] sm:$0xff] }
  0x4f   : > { %750 = vmatpush.bf16.msrb.mxu0 %v2634_v42  ;;  %v3171_v39 = vld [vmem:[#allocation17_spill] sm:$0xff] }
  0x50   : > { %763 = vmatpush.bf16.msrb.mxu1 %v2638_v27  ;;  %776 = vmatpush.bf16.msrb.mxu2 %v2640_v1 }
  0x51   : > { %789 = vmatpush.bf16.msrb.mxu3 %v2652_v26 }
  0x53   : > { %751 = vmatpush.bf16.msrb.mxu0 %v2670_v40 }
  0x54   : > { %764 = vmatpush.bf16.msrb.mxu1 %v2674_v10  ;;  %777 = vmatpush.bf16.msrb.mxu2 %v2676_v37 }
  0x55   : > { %790 = vmatpush.bf16.msrb.mxu3 %v2679_v53 }
  0x56   : > { %752 = vmatmul.bf16.vlgmr.msrb.gmra.mxu0 %v2514_v11 }
  0x57   : > { %838 = vmatpush.bf16.msra.mxu0 %v2098_v3  ;;  %778 = vmatmul.bf16.vlgmr.msrb.gmra.mxu2 %v2514_v11  ;;  %v3165_v11 = vld [vmem:[#allocation11_spill] sm:$0xff] }
  0x58   : > { %851 = vmatpush.bf16.msra.mxu1 %v2109_v7  ;;  %864 = vmatpush.bf16.msra.mxu2 %v2111_v8 }
  0x59   : > { %877 = vmatpush.bf16.msra.mxu3 %v2123_v12  ;;  %765 = vmatmul.bf16.vlgmr.msrb.gmra.mxu1 %v2516_v13 }
  0x5a   : > { %791 = vmatmul.bf16.vlgmr.msrb.gmra.mxu3 %v2516_v13  ;;  %v3166_v13 = vld [vmem:[#allocation12_spill] sm:$0xff] }
  0x5b   : > { %839 = vmatpush.bf16.msra.mxu0 %v2136_v16 }
  0x5c   : > { %852 = vmatpush.bf16.msra.mxu1 %v2138_v17  ;;  %865 = vmatpush.bf16.msra.mxu2 %v2150_v21 }
  0x5d   : > { %878 = vmatpush.bf16.msra.mxu3 %v2161_v25 }
  0x5f   : > { %840 = vmatpush.bf16.msra.mxu0 %v2173_v29 }
  0x60   : > { %853 = vmatpush.bf16.msra.mxu1 %v2186_v33  ;;  %866 = vmatpush.bf16.msra.mxu2 %v2188_v34 }
  0x61   : > { %879 = vmatpush.bf16.msra.mxu3 %v2200_v38 }
  0x63   : > { %841 = vmatpush.bf16.msra.mxu0 %v2218_v44 }
  0x64   : > { %854 = vmatpush.bf16.msra.mxu1 %v2222_v45  ;;  %867 = vmatpush.bf16.msra.mxu2 %v2224_v46 }
  0x65   : > { %880 = vmatpush.bf16.msra.mxu3 %v2236_v50 }
  0x67   : > { %842 = vmatpush.bf16.msra.mxu0 %v2254_v56 }
  0x68   : > { %855 = vmatpush.bf16.msra.mxu1 %v2258_v57  ;;  %868 = vmatpush.bf16.msra.mxu2 %v2260_v58 }
  0x69   : > { %881 = vmatpush.bf16.msra.mxu3 %v2272_v62 }
  0x6b   : > { %843 = vmatpush.bf16.msra.mxu0 %v2290_v5 }
  0x6c   : > { %856 = vmatpush.bf16.msra.mxu1 %v2294_v6  ;;  %869 = vmatpush.bf16.msra.mxu2 %v2296_v9 }
  0x6d   : > { %882 = vmatpush.bf16.msra.mxu3 %v2308_v14 }
  0x6f   : > { %844 = vmatpush.bf16.msra.mxu0 %v2326_v23 }
  0x70   : > { %857 = vmatpush.bf16.msra.mxu1 %v2339_v28  ;;  %870 = vmatpush.bf16.msra.mxu2 %v2341_v30 }
  0x71   : > { %883 = vmatpush.bf16.msra.mxu3 %v2353_v36 }
  0x73   : > { %845 = vmatpush.bf16.msra.mxu0 %v2372_v43 }
  0x74   : > { %858 = vmatpush.bf16.msra.mxu1 %v2385_v51  ;;  %871 = vmatpush.bf16.msra.mxu2 %v2387_v52 }
  0x75   : > { %884 = vmatpush.bf16.msra.mxu3 %v2399_v55 }
  0x76   : > { %846 = vmatmul.bf16.vlgmr.msra.gmra.mxu0 %v2688_v54 }
  0x77   : > { %890 = vmatpush.bf16.msrb.mxu0 %v2401_v59  ;;  %872 = vmatmul.bf16.vlgmr.msra.gmra.mxu2 %v2688_v54 }
  0x78   : > { %903 = vmatpush.bf16.msrb.mxu1 %v2406_v61  ;;  %916 = vmatpush.bf16.msrb.mxu2 %v2408_v63 }
  0x79   : > { %929 = vmatpush.bf16.msrb.mxu3 %v2418_v2  ;;  %859 = vmatmul.bf16.vlgmr.msra.gmra.mxu1 %v2691_v24 }
  0x7a   : > { %885 = vmatmul.bf16.vlgmr.msra.gmra.mxu3 %v2691_v24 }
  0x7b   : > { %891 = vmatpush.bf16.msrb.mxu0 %v2445_v19 }
  0x7c   : > { %904 = vmatpush.bf16.msrb.mxu1 %v2449_v20  ;;  %917 = vmatpush.bf16.msrb.mxu2 %v2451_v22 }
  0x7d   : > { %930 = vmatpush.bf16.msrb.mxu3 %v2463_v31 }
  0x7f   : > { %892 = vmatpush.bf16.msrb.mxu0 %v2481_v41 }
  0x80   : > { %905 = vmatpush.bf16.msrb.mxu1 %v2491_v48  ;;  %918 = vmatpush.bf16.msrb.mxu2 %v2493_v49 }
  0x81   : > { %931 = vmatpush.bf16.msrb.mxu3 %v2503_v0 }
  0x83   : > { %893 = vmatpush.bf16.msrb.mxu0 %v2523_v18  ;;  %v3173_v18 = vld [vmem:[#allocation19_spill] sm:$0xff] }
  0x84   : > { %906 = vmatpush.bf16.msrb.mxu1 %v3165_v11  ;;  %919 = vmatpush.bf16.msrb.mxu2 %v3166_v13  ;;  %v3174_v11 = vld [vmem:[#allocation20_spill] sm:$0xff] }
  0x85   : > { %932 = vmatpush.bf16.msrb.mxu3 %v3167_v4 }
  0x87   : > { %894 = vmatpush.bf16.msrb.mxu0 %v3168_v15 }
  0x88   : > { %907 = vmatpush.bf16.msrb.mxu1 %v3169_v32  ;;  %920 = vmatpush.bf16.msrb.mxu2 %v3170_v35 }
  0x89   : > { %933 = vmatpush.bf16.msrb.mxu3 %v3171_v39 }
  0x8b   : > { %895 = vmatpush.bf16.msrb.mxu0 %v2598_v47 }
  0x8c   : > { %908 = vmatpush.bf16.msrb.mxu1 %v3172_v60  ;;  %921 = vmatpush.bf16.msrb.mxu2 %v3173_v18 }
  0x8d   : > { %934 = vmatpush.bf16.msrb.mxu3 %v3174_v11 }
  0x8f   : > { %896 = vmatpush.bf16.msrb.mxu0 %v2634_v42  ;;  %v2765_v42 = vld [vmem:[#allocation1] sm:$0xff] }
  0x90   : > { %909 = vmatpush.bf16.msrb.mxu1 %v2638_v27  ;;  %922 = vmatpush.bf16.msrb.mxu2 %v2640_v1  ;;  %v356_v27 = vld [vmem:[%s2432_s24 + $0x6] sm:$0x3]  ;;  %v2768_v1 = vld [vmem:[#allocation1 + $0x9] sm:$0xff]  ;;  %s1366_s24 = scalar_lea.hbm %s3104_s4, %s1769_s10 }
  0x91   : > { %935 = vmatpush.bf16.msrb.mxu3 %v2652_v26  ;;  %1133 = vst [vmem:[#allocation1] ss:$9 sm:$0xff] %v356_v27  ;;  %v352_v27 = vld [vmem:[%s3103_s3] sm:$0xf]  ;;  %s1370_s14 = sshll.u32 %s1366_s24, 4  ;;  %s1371_s14 = int_to_ptr.hbm [resolvable:$true] %s1370_s14 }
  0x92   : > { %s1938_s17 = sshra.s32 %s1371_s14, 4  ;;  %s1939_s17 = int_to_ptr.hbm [resolvable:$true] %s1938_s17 }
  0x93   : > { %897 = vmatpush.bf16.msrb.mxu0 %v2670_v40  ;;  %p1945_p1 = scmp.lt.s32.totalorder %s1939_s17, %s3104_s4 }
  0x94   : > { %910 = vmatpush.bf16.msrb.mxu1 %v2674_v10  ;;  %923 = vmatpush.bf16.msrb.mxu2 %v2676_v37 }
  0x95   : > { %936 = vmatpush.bf16.msrb.mxu3 %v2679_v53 }
  0x96   : > { %898 = vmatmul.bf16.vlgmr.msrb.gmra.mxu0 %v2688_v54 }
  0x97   : > { %988 = vmatpush.bf16.msra.mxu0 %v2098_v3  ;;  %924 = vmatmul.bf16.vlgmr.msrb.gmra.mxu2 %v2688_v54  ;;  %v3175_v54 = vld [vmem:[#allocation10_spill] sm:$0xff] }
  0x98   : > { %1001 = vmatpush.bf16.msra.mxu1 %v2109_v7  ;;  %1014 = vmatpush.bf16.msra.mxu2 %v2111_v8 }
  0x99   : > { %1027 = vmatpush.bf16.msra.mxu3 %v2123_v12  ;;  %911 = vmatmul.bf16.vlgmr.msrb.gmra.mxu1 %v2691_v24 }
  0x9a   : > { %937 = vmatmul.bf16.vlgmr.msrb.gmra.mxu3 %v2691_v24  ;;  %v2823_v24 = vperm.slane %v352_v27, 0 }
  0x9b   : > { %989 = vmatpush.bf16.msra.mxu0 %v2136_v16 }
  0x9c   : > { %1002 = vmatpush.bf16.msra.mxu1 %v2138_v17  ;;  %1015 = vmatpush.bf16.msra.mxu2 %v2150_v21 }
  0x9d   : > { %1028 = vmatpush.bf16.msra.mxu3 %v2161_v25 }
  0x9f   : > { %990 = vmatpush.bf16.msra.mxu0 %v2173_v29 }
  0xa0   : > { %1003 = vmatpush.bf16.msra.mxu1 %v2186_v33  ;;  %1016 = vmatpush.bf16.msra.mxu2 %v2188_v34 }
  0xa1   : > { %1029 = vmatpush.bf16.msra.mxu3 %v2200_v38 }
  0xa3   : > { %991 = vmatpush.bf16.msra.mxu0 %v2218_v44 }
  0xa4   : > { %1004 = vmatpush.bf16.msra.mxu1 %v2222_v45  ;;  %1017 = vmatpush.bf16.msra.mxu2 %v2224_v46 }
  0xa5   : > { %1030 = vmatpush.bf16.msra.mxu3 %v2236_v50 }
  0xa7   : > { %992 = vmatpush.bf16.msra.mxu0 %v2254_v56 }
  0xa8   : > { %1005 = vmatpush.bf16.msra.mxu1 %v2258_v57  ;;  %1018 = vmatpush.bf16.msra.mxu2 %v2260_v58 }
  0xa9   : > { %1031 = vmatpush.bf16.msra.mxu3 %v2272_v62 }
  0xab   : > { %993 = vmatpush.bf16.msra.mxu0 %v2290_v5 }
  0xac   : > { %1006 = vmatpush.bf16.msra.mxu1 %v2294_v6  ;;  %1019 = vmatpush.bf16.msra.mxu2 %v2296_v9 }
  0xad   : > { %1032 = vmatpush.bf16.msra.mxu3 %v2308_v14 }
  0xaf   : > { %994 = vmatpush.bf16.msra.mxu0 %v2326_v23 }
  0xb0   : > { %1007 = vmatpush.bf16.msra.mxu1 %v2339_v28  ;;  %1020 = vmatpush.bf16.msra.mxu2 %v2341_v30 }
  0xb1   : > { %1033 = vmatpush.bf16.msra.mxu3 %v2353_v36 }
  0xb3   : > { %995 = vmatpush.bf16.msra.mxu0 %v2372_v43 }
  0xb4   : > { %1008 = vmatpush.bf16.msra.mxu1 %v2385_v51  ;;  %1021 = vmatpush.bf16.msra.mxu2 %v2387_v52 }
  0xb5   : > { %1034 = vmatpush.bf16.msra.mxu3 %v2399_v55 }
  0xb6   : > { %996 = vmatmul.bf16.vlgmr.msra.gmra.mxu0 %v2765_v42 }
  0xb7   : > { %1040 = vmatpush.bf16.msrb.mxu0 %v2401_v59  ;;  %1022 = vmatmul.bf16.vlgmr.msra.gmra.mxu2 %v2765_v42 }
  0xb8   : > { %1053 = vmatpush.bf16.msrb.mxu1 %v2406_v61  ;;  %1066 = vmatpush.bf16.msrb.mxu2 %v2408_v63 }
  0xb9   : > { %1079 = vmatpush.bf16.msrb.mxu3 %v2418_v2  ;;  %1009 = vmatmul.bf16.vlgmr.msra.gmra.mxu1 %v2768_v1 }
  0xba   : > { %1035 = vmatmul.bf16.vlgmr.msra.gmra.mxu3 %v2768_v1 }
  0xbb   : > { %1041 = vmatpush.bf16.msrb.mxu0 %v2445_v19 }
  0xbc   : > { %1054 = vmatpush.bf16.msrb.mxu1 %v2449_v20  ;;  %1067 = vmatpush.bf16.msrb.mxu2 %v2451_v22  ;;  %v3176_v20 = vld [vmem:[#allocation11_spill] sm:$0xff] }
  0xbd   : > { %1080 = vmatpush.bf16.msrb.mxu3 %v2463_v31  ;;  %v714_v31 = vpop.f32.mrf.mxu1 }
  0xbf   : > { %1042 = vmatpush.bf16.msrb.mxu0 %v2481_v41  ;;  %v701_v41 = vpop.f32.mrf.mxu0 }
  0xc0   : > { %1055 = vmatpush.bf16.msrb.mxu1 %v2491_v48  ;;  %1068 = vmatpush.bf16.msrb.mxu2 %v2493_v49  ;;  %v702_v49 = vadd.f32 %v701_v41, %v2823_v24  ;;  %v2830_v48 = vperm.slane %v352_v27, 1  ;;  %v740_v41 = vpop.f32.mrf.mxu3 }
  0xc1   : > { %1081 = vmatpush.bf16.msrb.mxu3 %v2503_v0 }
  0xc3   : > { %1043 = vmatpush.bf16.msrb.mxu0 %v3175_v54  ;;  %v2835_v54 = vadd.f32 %v714_v31, %v702_v49  ;;  %v3178_v31 = vld [vmem:[#allocation22_spill] sm:$0xff]  ;;  %v3179_v49 = vld [vmem:[#allocation23_spill] sm:$0xff] }
  0xc4   : > { %1056 = vmatpush.bf16.msrb.mxu1 %v3176_v20  ;;  %1069 = vmatpush.bf16.msrb.mxu2 %v3166_v13  ;;  %v727_v20 = vpop.f32.mrf.mxu2 }
  0xc5   : > { %1082 = vmatpush.bf16.msrb.mxu3 %v3167_v4  ;;  %v728_v4 = vadd.f32 %v727_v20, %v2830_v48 }
  0xc7   : > { %1044 = vmatpush.bf16.msrb.mxu0 %v3168_v15  ;;  %v2842_v15 = vadd.f32 %v740_v41, %v728_v4  ;;  %v3188_v41 = vld [vmem:[#allocation14_spill] sm:$0xff] }
  0xc8   : > { %1057 = vmatpush.bf16.msrb.mxu1 %v3169_v32  ;;  %1070 = vmatpush.bf16.msrb.mxu2 %v3170_v35  ;;  %v703_v32 = vpop.f32.mrf.mxu0  ;;  %v3177_v35 = vld [vmem:[#allocation21_spill] sm:$0xff]  ;;  %v742_v4 = vpop.f32.mrf.mxu3 }
  0xc9   : > { %1083 = vmatpush.bf16.msrb.mxu3 %v3171_v39  ;;  %v716_v39 = vpop.f32.mrf.mxu1  ;;  %v3189_v4 = vld [vmem:[#allocation15_spill] sm:$0xff] }
  0xcb   : > { %1045 = vmatpush.bf16.msrb.mxu0 %v2598_v47 }
  0xcc   : > { %1058 = vmatpush.bf16.msrb.mxu1 %v3172_v60  ;;  %1071 = vmatpush.bf16.msrb.mxu2 %v3173_v18  ;;  %v729_v20 = vpop.f32.mrf.mxu2 }
  0xcd   : > { %1084 = vmatpush.bf16.msrb.mxu3 %v3174_v11 }
  0xcf   : > { %1046 = vmatpush.bf16.msrb.mxu0 %v3177_v35 }
  0xd0   : > { %1059 = vmatpush.bf16.msrb.mxu1 %v3178_v31  ;;  %1072 = vmatpush.bf16.msrb.mxu2 %v3179_v49 }
  0xd1   : > { %1085 = vmatpush.bf16.msrb.mxu3 %v2652_v26 }
  0xd3   : > { %1047 = vmatpush.bf16.msrb.mxu0 %v2670_v40 }
  0xd4   : > { %1060 = vmatpush.bf16.msrb.mxu1 %v2674_v10  ;;  %1073 = vmatpush.bf16.msrb.mxu2 %v2676_v37 }
  0xd5   : > { %1086 = vmatpush.bf16.msrb.mxu3 %v2679_v53 }
  0xd6   : > { %1048 = vmatmul.bf16.vlgmr.msrb.gmra.mxu0 %v2765_v42 }
  0xd7   : > { %1138 = vmatpush.bf16.msra.mxu0 %v2098_v3  ;;  %1074 = vmatmul.bf16.vlgmr.msrb.gmra.mxu2 %v2765_v42  ;;  %v2863_v3 = vperm.slane %v352_v27, 2 }
  0xd8   : > { %1151 = vmatpush.bf16.msra.mxu1 %v2109_v7  ;;  %1164 = vmatpush.bf16.msra.mxu2 %v2111_v8  ;;  %v753_v7 = vpop.f32.mrf.mxu0 }
  0xd9   : > { %1177 = vmatpush.bf16.msra.mxu3 %v2123_v12  ;;  %1061 = vmatmul.bf16.vlgmr.msrb.gmra.mxu1 %v2768_v1  ;;  %v754_v8 = vadd.f32 %v753_v7, %v2863_v3  ;;  %v766_v12 = vpop.f32.mrf.mxu1  ;;  %v3190_v7 = vld [vmem:[#allocation16_spill] sm:$0xff] }
  0xda   : > { %1087 = vmatmul.bf16.vlgmr.msrb.gmra.mxu3 %v2768_v1 }
  0xdb   : > { %1139 = vmatpush.bf16.msra.mxu0 %v2136_v16  ;;  %v2871_v16 = vperm.slane %v352_v27, 3 }
  0xdc   : > { %1152 = vmatpush.bf16.msra.mxu1 %v2138_v17  ;;  %1165 = vmatpush.bf16.msra.mxu2 %v2150_v21  ;;  %v2873_v17 = vadd.f32 %v766_v12, %v754_v8  ;;  %v779_v21 = vpop.f32.mrf.mxu2  ;;  %v3191_v12 = vld [vmem:[#allocation17_spill] sm:$0xff] }
  0xdd   : > { %1178 = vmatpush.bf16.msra.mxu3 %v2161_v25  ;;  %v780_v25 = vadd.f32 %v779_v21, %v2871_v16 }
  0xdf   : > { %1140 = vmatpush.bf16.msra.mxu0 %v2173_v29  ;;  %v792_v29 = vpop.f32.mrf.mxu3 }
  0xe0   : > { %1153 = vmatpush.bf16.msra.mxu1 %v2186_v33  ;;  %1166 = vmatpush.bf16.msra.mxu2 %v2188_v34  ;;  %v2881_v33 = vadd.f32 %v792_v29, %v780_v25  ;;  %v755_v34 = vpop.f32.mrf.mxu0 }
  0xe1   : > { %1179 = vmatpush.bf16.msra.mxu3 %v2200_v38  ;;  %v768_v38 = vpop.f32.mrf.mxu1 }
  0xe3   : > { %1141 = vmatpush.bf16.msra.mxu0 %v2218_v44 }
  0xe4   : > { %1154 = vmatpush.bf16.msra.mxu1 %v2222_v45  ;;  %1167 = vmatpush.bf16.msra.mxu2 %v2224_v46  ;;  %v781_v44 = vpop.f32.mrf.mxu2  ;;  %v796_v46 = vmul.f32 %v2835_v54, %v2835_v54 }
  0xe5   : > { %1180 = vmatpush.bf16.msra.mxu3 %v2236_v50  ;;  %v2899_v50 = vld [vmem:[#allocation1] sm:$0xff] }
  0xe7   : > { %1142 = vmatpush.bf16.msra.mxu0 %v2254_v56  ;;  %v794_v45 = vpop.f32.mrf.mxu3  ;;  %v800_v56 = vmul.f32 %v796_v46, %v2835_v54 }
  0xe8   : > { %1155 = vmatpush.bf16.msra.mxu1 %v2258_v57  ;;  %1168 = vmatpush.bf16.msra.mxu2 %v2260_v58  ;;  %v2904_v57 = vld [vmem:[#allocation1 + $0x9] sm:$0xff]  ;;  %v797_v58 = vmul.f32 %v2842_v15, %v2842_v15 }
  0xe9   : > { %1181 = vmatpush.bf16.msra.mxu3 %v2272_v62  ;;  %v804_v62 = vmul.f32 0.044715, %v800_v56 }
  0xeb   : > { %1143 = vmatpush.bf16.msra.mxu0 %v2290_v5  ;;  %v3180_v5 = vld [vmem:[#allocation5_spill] sm:$0xff] }
  0xec   : > { %1156 = vmatpush.bf16.msra.mxu1 %v2294_v6  ;;  %1169 = vmatpush.bf16.msra.mxu2 %v2296_v9  ;;  %v3181_v6 = vld [vmem:[#allocation6_spill] sm:$0xff]  ;;  %v801_v9 = vmul.f32 %v797_v58, %v2842_v15 }
  0xed   : > { %1182 = vmatpush.bf16.msra.mxu3 %v2308_v14 }
  0xef   : > { %1144 = vmatpush.bf16.msra.mxu0 %v2326_v23  ;;  %v808_v23 = vadd.f32 %v804_v62, %v2835_v54 }
  0xf0   : > { %1157 = vmatpush.bf16.msra.mxu1 %v2339_v28  ;;  %1170 = vmatpush.bf16.msra.mxu2 %v2341_v30  ;;  %v3182_v28 = vld [vmem:[#allocation7_spill] sm:$0xff] }
  0xf1   : > { %1183 = vmatpush.bf16.msra.mxu3 %v2353_v36 }
  0xf3   : > { %1145 = vmatpush.bf16.msra.mxu0 %v2372_v43  ;;  %v847_v14 = vpop.f32.mrf.mxu0  ;;  %v3183_v43 = vld [vmem:[#allocation8_spill] sm:$0xff] }
  0xf4   : > { %1158 = vmatpush.bf16.msra.mxu1 %v2385_v51  ;;  %1171 = vmatpush.bf16.msra.mxu2 %v2387_v52  ;;  %v848_v30 = vadd.f32 %v847_v14, %v2823_v24  ;;  %v3184_v51 = vld [vmem:[#allocation9_spill] sm:$0xff] }
  0xf5   : > { %1184 = vmatpush.bf16.msra.mxu3 %v2399_v55  ;;  %v805_v55 = vmul.f32 0.044715, %v801_v9 }
  0xf6   : > { %1146 = vmatmul.bf16.vlgmr.msra.gmra.mxu0 %v2899_v50  ;;  %v860_v36 = vpop.f32.mrf.mxu1 }
  0xf7   : > { %1190 = vmatpush.bf16.msrb.mxu0 %v2401_v59  ;;  %1172 = vmatmul.bf16.vlgmr.msra.gmra.mxu2 %v2899_v50  ;;  %v861_v52 = vadd.f32 %v860_v36, %v848_v30  ;;  %v812_v59 = vmul.f32 0.7978846, %v808_v23  ;;  %v809_v42 = vadd.f32 %v805_v55, %v2842_v15 }
  0xf8   : > { %1203 = vmatpush.bf16.msrb.mxu1 %v2406_v61  ;;  %1216 = vmatpush.bf16.msrb.mxu2 %v2408_v63  ;;  %v3185_v61 = vld [vmem:[#allocation10_spill] sm:$0xff] }
  0xf9   : > { %1229 = vmatpush.bf16.msrb.mxu3 %v2418_v2  ;;  %1159 = vmatmul.bf16.vlgmr.msra.gmra.mxu1 %v2904_v57  ;;  %v942_v63 = vmul.f32 %v861_v52, %v861_v52  ;;  %v3186_v2 = vld [vmem:[#allocation11_spill] sm:$0xff]  ;;  %1892 = vtanh.f32 %v812_v59  ;;  %v813_v21 = vmul.f32 0.7978846, %v809_v42 }
  0xfa   : > { %1185 = vmatmul.bf16.vlgmr.msra.gmra.mxu3 %v2904_v57  ;;  %v873_v1 = vpop.f32.mrf.mxu2 }
  0xfb   : > { %1191 = vmatpush.bf16.msrb.mxu0 %v2445_v19  ;;  %v3187_v19 = vld [vmem:[#allocation13_spill] sm:$0xff]  ;;  %v874_v32 = vadd.f32 %v873_v1, %v2830_v48 }
  0xfc   : > { %1204 = vmatpush.bf16.msrb.mxu1 %v3180_v5  ;;  %1217 = vmatpush.bf16.msrb.mxu2 %v2451_v22  ;;  %v946_v22 = vmul.f32 %v942_v63, %v861_v52 }
  0xfd   : > { %1230 = vmatpush.bf16.msrb.mxu3 %v3181_v6  ;;  %v886_v39 = vpop.f32.mrf.mxu3 }
  0xfe   : > { %v950_v27 = vmul.f32 0.044715, %v946_v22  ;;  %v862_v20 = vpop.f32.mrf.mxu1 }
  0xff   : > { %1192 = vmatpush.bf16.msrb.mxu0 %v3182_v28  ;;  %v1893_v38 = vpop.eup %1892 }
 0x100   : > { %1205 = vmatpush.bf16.msrb.mxu1 %v3183_v43  ;;  %1218 = vmatpush.bf16.msrb.mxu2 %v3184_v51  ;;  %v954_v8 = vadd.f32 %v950_v27, %v861_v52  ;;  %v820_v56 = vadd.f32 1.0, %v1893_v38 }
 0x101   : > { %1231 = vmatpush.bf16.msrb.mxu3 %v2503_v0  ;;  %v849_v0 = vpop.f32.mrf.mxu0 }
 0x102   : > { %v958_v29 = vmul.f32 0.7978846, %v954_v8  ;;  %v875_v44 = vpop.f32.mrf.mxu2  ;;  %v824_v62 = vmul.f32 0.5, %v820_v56 }
 0x103   : > { %1193 = vmatpush.bf16.msrb.mxu0 %v3185_v61 }
 0x104   : > { %1206 = vmatpush.bf16.msrb.mxu1 %v3186_v2  ;;  %1219 = vmatpush.bf16.msrb.mxu2 %v3166_v13  ;;  %v887_v13 = vadd.f32 %v886_v39, %v874_v32  ;;  %1894 = vtanh.f32 %v958_v29 }
 0x105   : > { %1232 = vmatpush.bf16.msrb.mxu3 %v3187_v19  ;;  %1896 = vtanh.f32 %v813_v21  ;;  %v888_v46 = vpop.f32.mrf.mxu3 }
 0x106   : > { %v943_v25 = vmul.f32 %v887_v13, %v887_v13 }
 0x107   : > { %1194 = vmatpush.bf16.msrb.mxu0 %v3188_v41 }
 0x108   : > { %1207 = vmatpush.bf16.msrb.mxu1 %v3189_v4  ;;  %1220 = vmatpush.bf16.msrb.mxu2 %v3190_v7  ;;  %v947_v34 = vmul.f32 %v943_v25, %v887_v13 }
 0x109   : > { %1233 = vmatpush.bf16.msrb.mxu3 %v3191_v12 }
 0x10a   : > { %v951_v45 = vmul.f32 0.044715, %v947_v34 }
 0x10b   : > { %1195 = vmatpush.bf16.msrb.mxu0 %v2598_v47  ;;  %v798_v47 = vmul.f32 %v2873_v17, %v2873_v17 }
 0x10c   : > { %1208 = vmatpush.bf16.msrb.mxu1 %v3172_v60  ;;  %1221 = vmatpush.bf16.msrb.mxu2 %v3173_v18  ;;  %v955_v58 = vadd.f32 %v951_v45, %v887_v13  ;;  %v1895_v60 = vpop.eup %1894 }
 0x10d   : > { %1234 = vmatpush.bf16.msrb.mxu3 %v3174_v11  ;;  %v1897_v11 = vpop.eup %1896  ;;  %v966_v5 = vadd.f32 1.0, %v1895_v60 }
 0x10e   : > { %v959_v18 = vmul.f32 0.7978846, %v955_v58 }
 0x10f   : > { %1196 = vmatpush.bf16.msrb.mxu0 %v3177_v35  ;;  %v802_v35 = vmul.f32 %v798_v47, %v2873_v17 }
 0x110   : > { %1209 = vmatpush.bf16.msrb.mxu1 %v3178_v31  ;;  %1222 = vmatpush.bf16.msrb.mxu2 %v3179_v49  ;;  %1898 = vtanh.f32 %v959_v18  ;;  %v970_v31 = vmul.f32 0.5, %v966_v5  ;;  %v799_v49 = vmul.f32 %v2881_v33, %v2881_v33 }
 0x111   : > { %1235 = vmatpush.bf16.msrb.mxu3 %v2652_v26  ;;  %v821_v26 = vadd.f32 1.0, %v1897_v11 }
 0x112   : > { %v803_v23 = vmul.f32 %v799_v49, %v2881_v33 }
 0x113   : > { %1197 = vmatpush.bf16.msrb.mxu0 %v2670_v40  ;;  %v828_v40 = vmul.f32 %v824_v62, %v2835_v54  ;;  %v899_v28 = vpop.f32.mrf.mxu0 }
 0x114   : > { %1210 = vmatpush.bf16.msrb.mxu1 %v2674_v10  ;;  %1223 = vmatpush.bf16.msrb.mxu2 %v2676_v37  ;;  %v974_v10 = vmul.f32 %v970_v31, %v861_v52  ;;  %v806_v37 = vmul.f32 0.044715, %v802_v35  ;;  %v900_v54 = vadd.f32 %v899_v28, %v2863_v3 }
 0x115   : > { %1236 = vmatpush.bf16.msrb.mxu3 %v2679_v53  ;;  %v825_v53 = vmul.f32 0.5, %v821_v26 }
 0x116   : > { %1198 = vmatmul.bf16.vlgmr.msrb.gmra.mxu0 %v2899_v50  ;;  %v1899_v6 = vpop.eup %1898  ;;  %v2958_v9 = vadd.f32 %v974_v10, %v828_v40  ;;  %v810_v30 = vadd.f32 %v806_v37, %v2873_v17  ;;  %v912_v36 = vpop.f32.mrf.mxu1 }
 0x117   : > { %1211 = vmatmul.bf16.vlgmr.msrb.gmra.mxu1 %v2904_v57  ;;  %1224 = vmatmul.bf16.vlgmr.msrb.gmra.mxu2 %v2899_v50  ;;  %v967_v14 = vadd.f32 1.0, %v1899_v6  ;;  %v829_v43 = vmul.f32 %v825_v53, %v2842_v15  ;;  %v913_v52 = vadd.f32 %v912_v36, %v900_v54 }
 0x118   : > { %1237 = vmatmul.bf16.vlgmr.msrb.gmra.mxu3 %v2904_v57  ;;  %v807_v57 = vmul.f32 0.044715, %v803_v23  ;;  %v814_v55 = vmul.f32 0.7978846, %v810_v30 }
 0x119   : > { %v971_v50 = vmul.f32 0.5, %v967_v14  ;;  %v944_v61 = vmul.f32 %v913_v52, %v913_v52 }
 0x11a   : > { %v925_v2 = vpop.f32.mrf.mxu2  ;;  %v811_v19 = vadd.f32 %v807_v57, %v2881_v33  ;;  %1900 = vtanh.f32 %v814_v55 }
 0x11b   : > { %v975_v51 = vmul.f32 %v971_v50, %v887_v13  ;;  %v948_v63 = vmul.f32 %v944_v61, %v913_v52  ;;  %v926_v22 = vadd.f32 %v925_v2, %v2871_v16  ;;  %v901_v42 = vpop.f32.mrf.mxu0 }
 0x11c   : > { %v815_v27 = vmul.f32 0.7978846, %v811_v19 }
 0x11d   : > { %v2964_v59 = vadd.f32 %v975_v51, %v829_v43  ;;  %v938_v1 = vpop.f32.mrf.mxu3  ;;  %v952_v32 = vmul.f32 0.044715, %v948_v63 }
 0x11e   : > { %v914_v39 = vpop.f32.mrf.mxu1  ;;  %v939_v0 = vadd.f32 %v938_v1, %v926_v22 }
 0x11f   : > { %v956_v15 = vadd.f32 %v952_v32, %v913_v52 }
 0x120   : > { %v945_v41 = vmul.f32 %v939_v0, %v939_v0  ;;  %v1901_v7 = vpop.eup %1900 }
 0x121   : > { %v960_v20 = vmul.f32 0.7978846, %v956_v15  ;;  %v822_v21 = vadd.f32 1.0, %v1901_v7 }
 0x122   : > { %v949_v4 = vmul.f32 %v945_v41, %v939_v0  ;;  %v927_v13 = vpop.f32.mrf.mxu2 }
 0x123   : > { %1902 = vtanh.f32 %v960_v20  ;;  %v826_v44 = vmul.f32 0.5, %v822_v21 }
 0x124   : > { %1904 = vtanh.f32 %v815_v27  ;;  %v953_v8 = vmul.f32 0.044715, %v949_v4 }
 0x125   : > { %v940_v12 = vpop.f32.mrf.mxu3  ;;  %v830_v58 = vmul.f32 %v826_v44, %v2873_v17 }
 0x126   : > { %v957_v25 = vadd.f32 %v953_v8, %v939_v0 }
 0x128   : > { %v961_v29 = vmul.f32 0.7978846, %v957_v25 }
 0x129   : > { %v1903_v34 = vpop.eup %1902 }
 0x12a   : > { %v1905_v38 = vpop.eup %1904  ;;  %v968_v45 = vadd.f32 1.0, %v1903_v34  ;;  %1906 = vtanh.f32 %v961_v29 }
 0x12b   : > { %v823_v56 = vadd.f32 1.0, %v1905_v38 }
 0x12c   : > { %v972_v46 = vmul.f32 0.5, %v968_v45 }
 0x12d   : > { %v827_v11 = vmul.f32 0.5, %v823_v56 }
 0x12e   : > { %v976_v47 = vmul.f32 %v972_v46, %v913_v52 }
 0x12f   : > { %v831_v26 = vmul.f32 %v827_v11, %v2881_v33 }
 0x130   : > { %v1907_v18 = vpop.eup %1906  ;;  %v2969_v60 = vadd.f32 %v976_v47, %v830_v58 }
 0x131   : > { %v969_v62 = vadd.f32 1.0, %v1907_v18 }
 0x133   : > { %v997_v5 = vpop.f32.mrf.mxu0  ;;  %v973_v35 = vmul.f32 0.5, %v969_v62 }
 0x134   : > { %v998_v30 = vadd.f32 %v997_v5, %v2823_v24 }
 0x135   : > { %v977_v40 = vmul.f32 %v973_v35, %v939_v0 }
 0x136   : > { %v1010_v31 = vpop.f32.mrf.mxu1 }
 0x137   : > { %v2972_v49 = vadd.f32 %v977_v40, %v831_v26  ;;  %v1011_v51 = vadd.f32 %v1010_v31, %v998_v30  ;;  %v2999_v30 = vld [vmem:[%s278_s25] sm:$0xf]  ;;  %s1940_s25 = scalar_lea.hbm %s1939_s17, 4 }
 0x138   : > { %p1941_p12 = scmp.ne.s32.totalorder %s1939_s17, %s1940_s25  ;;  %p1946_p2 = scmp.lt.s32.totalorder %s1944_s7, %s1940_s25 }
 0x139   : > { %v1092_v52 = vmul.f32 %v1011_v51, %v1011_v51 }
 0x13a   : > { %v1023_v10 = vpop.f32.mrf.mxu2  ;;  %p1942_p13 = pnand %p1941_p12, %p2074_p4  ;;  %p1947_p3 = por %p1946_p2, %p1945_p1 }
 0x13b   : > { %v999_v6 = vpop.f32.mrf.mxu0  ;;  %v1024_v33 = vadd.f32 %v1023_v10, %v2830_v48  ;;  %v1096_v63 = vmul.f32 %v1092_v52, %v1011_v51 }
 0x13c   : > { %p1943_p0 = pneg %p1942_p13 }
 0x13d   : > { %v1036_v37 = vpop.f32.mrf.mxu3  ;;  %v1100_v19 = vmul.f32 0.044715, %v1096_v63 }
 0x13e   : > { %v1012_v53 = vpop.f32.mrf.mxu1  ;;  %v2976_v61 = vadd.f32 %v1036_v37, %v1024_v33  ;;  %p1948_p5 = pnand %p1947_p3, %p1943_p0 }
 0x13f   : > { %v1104_v1 = vadd.f32 %v1100_v19, %v1011_v51 }
 0x140   : > { %v1093_v2 = vmul.f32 %v2976_v61, %v2976_v61 }
 0x141   : > { %v1108_v39 = vmul.f32 0.7978846, %v1104_v1 }
 0x142   : > { %v1025_v14 = vpop.f32.mrf.mxu2  ;;  %v1097_v22 = vmul.f32 %v1093_v2, %v2976_v61 }
 0x143   : > { %1908 = vtanh.f32 %v1108_v39 }
 0x144   : > { %v1101_v42 = vmul.f32 0.044715, %v1097_v22 }
 0x145   : > { %v1038_v17 = vpop.f32.mrf.mxu3 }
 0x146   : > { %v1105_v41 = vadd.f32 %v1101_v42, %v2976_v61 }
 0x148   : > { %v1109_v8 = vmul.f32 0.7978846, %v1105_v41 }
 0x149   : > { %v1909_v44 = vpop.eup %1908 }
 0x14a   : > { %1910 = vtanh.f32 %v1109_v8  ;;  %v1116_v47 = vadd.f32 1.0, %v1909_v44 }
 0x14c   : > { %v1120_v26 = vmul.f32 0.5, %v1116_v47 }
 0x14e   : > { %v1124_v17 = vmul.f32 %v1120_v26, %v1011_v51 }
 0x150   : > { %v1911_v31 = vpop.eup %1910 }
 0x151   : > { %v1117_v53 = vadd.f32 1.0, %v1911_v31 }
 0x153   : > { %v1049_v23 = vpop.f32.mrf.mxu0 }
 0x154   : > { %v1050_v4 = vadd.f32 %v1049_v23, %v2863_v3 }
 0x156   : > { %v1062_v28 = vpop.f32.mrf.mxu1 }
 0x157   : > { %v2985_v38 = vadd.f32 %v1062_v28, %v1050_v4 }
 0x159   : > { %v1094_v18 = vmul.f32 %v2985_v38, %v2985_v38 }
 0x15a   : > { %v1075_v50 = vpop.f32.mrf.mxu2 }
 0x15b   : > { %v1051_v36 = vpop.f32.mrf.mxu0  ;;  %v1076_v56 = vadd.f32 %v1075_v50, %v2871_v16  ;;  %v1098_v40 = vmul.f32 %v1094_v18, %v2985_v38 }
 0x15d   : > { %v1088_v54 = vpop.f32.mrf.mxu3  ;;  %v1102_v23 = vmul.f32 0.044715, %v1098_v40 }
 0x15e   : > { %v1064_v43 = vpop.f32.mrf.mxu1  ;;  %v2990_v35 = vadd.f32 %v1088_v54, %v1076_v56  ;;  %v1121_v54 = vmul.f32 0.5, %v1117_v53 }
 0x15f   : > { %v1128_v43 = vadd.f32 %v1124_v17, %v2958_v9  ;;  %v1106_v33 = vadd.f32 %v1102_v23, %v2985_v38 }
 0x160   : > { %v1095_v14 = vmul.f32 %v2990_v35, %v2990_v35  ;;  %v1125_v51 = vmul.f32 %v1121_v54, %v2976_v61 }
 0x161   : > { %v1110_v1 = vmul.f32 0.7978846, %v1106_v33 }
 0x162   : > { %v1077_v57 = vpop.f32.mrf.mxu2  ;;  %v1099_v36 = vmul.f32 %v1095_v14, %v2990_v35 }
 0x163   : > { %v1284_v57 = vperm.slane %v2999_v30, 0 }
 0x164   : > { %v1103_v2 = vmul.f32 0.044715, %v1099_v36 }
 0x165   : > { %v1090_v55 = vpop.f32.mrf.mxu3 }
 0x166   : > { %v1107_v61 = vadd.f32 %v1103_v2, %v2990_v35 }
 0x168   : > { %v1111_v8 = vmul.f32 0.7978846, %v1107_v61 }
 0x173   : > { %v1147_v32 = vpop.f32.mrf.mxu0 }
 0x174   : > { %v1148_v0 = vadd.f32 %v1147_v32, %v2823_v24 }
 0x176   : > { %v1160_v15 = vpop.f32.mrf.mxu1 }
 0x177   : > { %v1161_v27 = vadd.f32 %v1160_v15, %v1148_v0 }
 0x179   : > { %v1242_v20 = vmul.f32 %v1161_v27, %v1161_v27 }
 0x17a   : > { %v1173_v13 = vpop.f32.mrf.mxu2 }
 0x17b   : > { %v1246_v7 = vmul.f32 %v1242_v20, %v1161_v27  ;;  %v1174_v12 = vadd.f32 %v1173_v13, %v2830_v48  ;;  %v1149_v25 = vpop.f32.mrf.mxu0  ;;  %v1285_v20 = vperm.slane %v2999_v30, 1 }
 0x17d   : > { %v1186_v21 = vpop.f32.mrf.mxu3  ;;  %v1250_v29 = vmul.f32 0.044715, %v1246_v7 }
 0x17e   : > { %v1162_v34 = vpop.f32.mrf.mxu1  ;;  %v1187_v24 = vadd.f32 %v1186_v21, %v1174_v12 }
 0x17f   : > { %v1254_v45 = vadd.f32 %v1250_v29, %v1161_v27 }
 0x180   : > { %v1243_v46 = vmul.f32 %v1187_v24, %v1187_v24 }
 0x181   : > { %v1258_v58 = vmul.f32 0.7978846, %v1254_v45 }
 0x182   : > { %v1247_v48 = vmul.f32 %v1243_v46, %v1187_v24  ;;  %v1175_v11 = vpop.f32.mrf.mxu2 }
 0x183   : > { %1912 = vtanh.f32 %v1258_v58 }
 0x184   : > { %v1251_v62 = vmul.f32 0.044715, %v1247_v48 }
 0x185   : > { %v1188_v5 = vpop.f32.mrf.mxu3 }
 0x186   : > { %v1255_v10 = vadd.f32 %v1251_v62, %v1187_v24 }
 0x188   : > { %v1259_v37 = vmul.f32 0.7978846, %v1255_v10 }
 0x189   : > { %v1913_v6 = vpop.eup %1912 }
 0x18a   : > { %v1266_v28 = vadd.f32 1.0, %v1913_v6  ;;  %1914 = vtanh.f32 %v1259_v37 }
 0x18b   : > { %1916 = vtanh.f32 %v1110_v1 }
 0x18c   : > { %v1270_v50 = vmul.f32 0.5, %v1266_v28  ;;  %1918 = vtanh.f32 %v1111_v8 }
 0x18e   : > { %v1274_v52 = vmul.f32 %v1270_v50, %v1161_v27  ;;  %v1129_v27 = vadd.f32 %v1125_v51, %v2964_v59  ;;  %v1286_v50 = vperm.slane %v2999_v30, 2  ;;  %v1287_v51 = vperm.slane %v2999_v30, 3 }
 0x190   : > { %v1915_v55 = vpop.eup %1914  ;;  %v1278_v63 = vadd.f32 %v1274_v52, %v1128_v43 }
 0x191   : > { %v1267_v19 = vadd.f32 1.0, %v1915_v55  ;;  %v1917_v46 = vpop.eup %1916 }
 0x192   : > { %v1292_v42 = vmul.f32 %v1284_v57, %v1278_v63  ;;  %v1118_v18 = vadd.f32 1.0, %v1917_v46  ;;  %v1919_v5 = vpop.eup %1918 }
 0x193   : > { %v1199_v22 = vpop.f32.mrf.mxu0  ;;  %v1271_v9 = vmul.f32 0.5, %v1267_v19  ;;  %v1119_v37 = vadd.f32 1.0, %v1919_v5 }
 0x194   : > { %v1200_v32 = vadd.f32 %v1199_v22, %v2863_v3  ;;  %v1212_v39 = vpop.f32.mrf.mxu1  ;;  %v1336_v0 = vperm.slane %v1292_v42, 0  ;;  %v1122_v31 = vmul.f32 0.5, %v1118_v18 }
 0x195   : > { %v1275_v41 = vmul.f32 %v1271_v9, %v1187_v24  ;;  %v1123_v17 = vmul.f32 0.5, %v1119_v37  ;;  %v1329_v9 = vld [vmem:[%s255_s21] sm:$0xf] }
 0x196   : > { %v1213_v15 = vadd.f32 %v1212_v39, %v1200_v32  ;;  %1340 = vst [vmem:[%s3011_s8] sm:$0xff] %v1336_v0  ;;  %v1126_v6 = vmul.f32 %v1122_v31, %v2985_v38 }
 0x197   : > { %v1279_v4 = vadd.f32 %v1275_v41, %v1129_v27  ;;  %v1127_v43 = vmul.f32 %v1123_v17, %v2990_v35 }
 0x198   : > { %v1244_v3 = vmul.f32 %v1213_v15, %v1213_v15  ;;  %v1130_v23 = vadd.f32 %v1126_v6, %v2969_v60 }
 0x199   : > { %v1293_v12 = vmul.f32 %v1285_v20, %v1279_v4  ;;  %v1131_v35 = vadd.f32 %v1127_v43, %v2972_v49 }
 0x19a   : > { %v1248_v7 = vmul.f32 %v1244_v3, %v1213_v15  ;;  %v1225_v13 = vpop.f32.mrf.mxu2 }
 0x19b   : > { %v1226_v21 = vadd.f32 %v1225_v13, %v2871_v16  ;;  %v1238_v25 = vpop.f32.mrf.mxu3  ;;  %v1201_v29 = vpop.f32.mrf.mxu0  ;;  %v3018_v44 = vpack.c.bf16 %v1293_v12, %v1292_v42  ;;  %v1337_v24 = vperm.slane %v1293_v12, 0 }
 0x19c   : > { %v1252_v34 = vmul.f32 0.044715, %v1248_v7  ;;  %v1214_v59 = vpop.f32.mrf.mxu1 }
 0x19d   : > { %v1239_v45 = vadd.f32 %v1238_v25, %v1226_v21  ;;  %1341 = vst [vmem:[%s3011_s8 + $0x8] sm:$0xff] %v1337_v24  ;;  %v1300_v1 = vrot.slane %v3018_v44, 3 }
 0x19e   : > { %v1256_v56 = vadd.f32 %v1252_v34, %v1213_v15 }
 0x19f   : > { %v1245_v58 = vmul.f32 %v1239_v45, %v1239_v45  ;;  %v1306_v0 = vsel %vm1303_vm3, %v3018_v44, %v1300_v1 }
 0x1a0   : > { %v1260_v47 = vmul.f32 0.7978846, %v1256_v56 }
 0x1a1   : > { %v1249_v48 = vmul.f32 %v1245_v58, %v1239_v45 }
 0x1a2   : > { %1920 = vtanh.f32 %v1260_v47  ;;  %v1227_v11 = vpop.f32.mrf.mxu2 }
 0x1a3   : > { %v1253_v62 = vmul.f32 0.044715, %v1249_v48  ;;  %v1240_v16 = vpop.f32.mrf.mxu3 }
 0x1a5   : > { %v1257_v26 = vadd.f32 %v1253_v62, %v1239_v45 }
 0x1a7   : > { %v1261_v40 = vmul.f32 0.7978846, %v1257_v26 }
 0x1a8   : > { %v1921_v10 = vpop.eup %1920 }
 0x1a9   : > { %v1268_v53 = vadd.f32 1.0, %v1921_v10  ;;  %1922 = vtanh.f32 %v1261_v40 }
 0x1ab   : > { %v1272_v14 = vmul.f32 0.5, %v1268_v53 }
 0x1ad   : > { %v1276_v28 = vmul.f32 %v1272_v14, %v1213_v15 }
 0x1af   : > { %v1923_v54 = vpop.eup %1922  ;;  %v1280_v36 = vadd.f32 %v1276_v28, %v1130_v23 }
 0x1b0   : > { %v1269_v33 = vadd.f32 1.0, %v1923_v54 }
 0x1b1   : > { %v1294_v38 = vmul.f32 %v1286_v50, %v1280_v36 }
 0x1b2   : > { %v1273_v52 = vmul.f32 0.5, %v1269_v33 }
 0x1b3   : > { %v1338_v55 = vperm.slane %v1294_v38, 0 }
 0x1b4   : > { %v1277_v63 = vmul.f32 %v1273_v52, %v1239_v45 }
 0x1b5   : > { %1342 = vst [vmem:[%s3011_s8 + $0x10] sm:$0xff] %v1338_v55 }
 0x1b6   : > { %v1281_v2 = vadd.f32 %v1277_v63, %v1131_v35 }
 0x1b8   : > { %v1295_v19 = vmul.f32 %v1287_v51, %v1281_v2 }
 0x1ba   : > { %v1297_v30 = vpack.c.bf16 %v1295_v19, %v1294_v38  ;;  %v1339_v22 = vperm.slane %v1295_v19, 0 }
 0x1bc   : > { %1343 = vst [vmem:[%s3011_s8 + $0x18] sm:$0xff] %v1339_v22  ;;  %v1301_v32 = vrot.slane %v1297_v30, 6  ;;  %v1302_v39 = vrot.slane %v1297_v30, 1 }
 0x1be   : > { %v1310_v15 = vsel %vm1307_vm6, %v1301_v32, %v1302_v39 }
 0x1bf   : > { %v1312_v27 = vsel %vm1311_vm14, %v1306_v0, %v1310_v15 }
 0x1c0   : > { %v1330_v61 = vsel %vm1328_vm15, %v1312_v27, %v1329_v9 }
 0x1c1   : > { %1331 = vst [vmem:[%s255_s21] sm:$0xf] %v1330_v61 }
 0x1c2   : > { %1951 = shalt.err (!%p1948_p5)
}
 0x1c3   : > { %1837 = dma.vmem_to_hbm [thread:$0]  (%p2074_p4), %s1369_s13, 64, %s1371_s14, %s1345_s15  }
 0x1c4 PF: > { %p1843_p6 = scmp.ge.s32.totalorder %s2002_s23, 2  ;;  %s1385_s16 = sand.u32 1, %s1982_s18  }
 0x1c5   : > { %s1386_s10 = scalar_lea.sflag [#allocation3], %s1385_s16 }
 0x1c6   : > { %p1840_p7 = pnand %p1843_p6, %p2081_p8 }
 0x1c8   : > { %p1841_p9 = pneg %p1840_p7 }
 0x1ca   : > { %1977 = dma.done.wait (%p1841_p9), %s1386_s10, 64  }
 0x1cb   : > { %1979 = vsyncadd (%p1841_p9), %s1386_s10, 4294967232  ;;  %s19_s23 = sadd.s32 1, %s2002_s23   ;;  %s3200_s18 = smov %s1986_s19 }
 0x1cc   : > { %p16_p10 = scmp.ge.s32.totalorder %s19_s23, 4   ;;  %s3201_s19 = smov %s1990_s20 }
 0x1cd   : > { %s3202_s20 = smov %s2087_s6  ;;  %s3203_s21 = smov %s1998_s22 }
 0x1ce   : > { %s3204_s22 = smov %s3206_s26  ;;  %18 = sbr.rel (!%p16_p10) target bundleno = 4 (0x4), region = 86 }
 0x1d3   :  { %1404 = vsyncpa [#allocation3], 1 }
 0x1d4   :  { %1406 = vsyncpa [#allocation3 + $0x1], 1 }

</bundles_post_ra>
